<compile_context>
chip_gen: v6e
topology: v6e:2x2x1
jax: 0.10.0
libtpu: 0.0.40
codegen_flags: <defaults>
</compile_context>

<pallas_src>
import jax
import jax.numpy as jnp
from jax.experimental import pallas as pl
from jax.experimental.pallas import tpu as pltpu


def _emb_kernel(x_ref, w_ref, b_ref, o_ref):
    # VPU cast (hidden under DMA) -> MXU matmul with f32 accumulation
    # -> VPU bias add -> EUP tanh -> lane-dense store.
    x = x_ref[...].astype(w_ref.dtype)
    acc = jnp.dot(x, w_ref[...], preferred_element_type=jnp.float32)
    acc = acc + b_ref[...]                      # (rows, tn) + (1, tn)
    o_ref[...] = jnp.tanh(acc).astype(o_ref.dtype)


def _round_up(v, m):
    return (v + m - 1) // m * m


def prepare_embedding_params(w_emb, b_emb, compute_dtype=jnp.bfloat16):
    """One-time prep: cast W to the compute dtype and lane-pad emb -> x128.

    Call once at parameter-init time; pass the results to custom_embedding.
    """
    in_dim, emb = w_emb.shape
    emb_p = _round_up(emb, 128)
    w_p = w_emb.astype(compute_dtype)
    b_p = b_emb.reshape(1, emb).astype(jnp.float32)
    if emb_p != emb:
        w_p = jnp.pad(w_p, ((0, 0), (0, emb_p - emb)))
        b_p = jnp.pad(b_p, ((0, 0), (0, emb_p - emb)))
    return w_p, b_p


def custom_embedding(x, w_prep, b_prep, *, emb=None, tm=512,
                     out_dtype=jnp.bfloat16, return_padded=False):
    """y = tanh(x @ W_emb + b_emb) using pre-padded bf16 weights.

    x:       (n, in_dim) in its stored dtype (cast to bf16 in-kernel).
    w_prep:  (in_dim, emb_p) from prepare_embedding_params.
    b_prep:  (1, emb_p)      from prepare_embedding_params.
    emb:     logical embedding size (columns kept after the padded slab).
    """
    n, in_dim = x.shape
    in_dim_w, emb_p = w_prep.shape
    assert in_dim == in_dim_w
    assert emb_p % 128 == 0
    if emb is None:
        emb = emb_p

    if n <= tm:
        # Small-batch / inference path: one row block, output lanes split
        # into 128-wide column blocks on a parallel grid axis (feeds both
        # v7x TensorCores; near-free on single-TC chips).
        tn = 128
        grid = (emb_p // tn,)
        in_specs = [
            pl.BlockSpec((n, in_dim), lambda j: (0, 0)),      # x resident
            pl.BlockSpec((in_dim, tn), lambda j: (0, j)),     # W column slab
            pl.BlockSpec((1, tn), lambda j: (0, j)),          # bias slab
        ]
        out_spec = pl.BlockSpec((n, tn), lambda j: (0, j))
    else:
        # Large-N path: MXU-height row tiles, ragged last block handled by
        # Pallas boundary masking (no materialized row padding).
        grid = (pl.cdiv(n, tm),)
        in_specs = [
            pl.BlockSpec((tm, in_dim), lambda i: (i, 0)),     # streamed x tile
            pl.BlockSpec((in_dim, emb_p), lambda i: (0, 0)),  # resident W
            pl.BlockSpec((1, emb_p), lambda i: (0, 0)),       # resident bias
        ]
        out_spec = pl.BlockSpec((tm, emb_p), lambda i: (i, 0))

    out = pl.pallas_call(
        _emb_kernel,
        out_shape=jax.ShapeDtypeStruct((n, emb_p), out_dtype),
        grid_spec=pl.GridSpec(grid=grid, in_specs=in_specs, out_specs=out_spec),
        compiler_params=pltpu.CompilerParams(
            dimension_semantics=("parallel",),
            vmem_limit_bytes=48 * 1024 * 1024,
        ),
    )(x, w_prep, b_prep)

    if return_padded:
        return out              # lane-dense (n, emb_p) slab for the consumer
    return out[:, :emb]


def custom_embedding_ref(x, w_emb, b_emb):
    return jnp.tanh(x @ w_emb + b_emb)


if __name__ == "__main__":
    # Module-faithful parameter shapes (inputDimSize=4894, embSize=200).
    inputDimSize = 4894
    embSize = 200

    key = jax.random.PRNGKey(0)
    kx, kw, kx2 = jax.random.split(key, 3)

    # Deterministic init mirroring the PyTorch module:
    #   W_emb = randn(inputDimSize, embSize) * 0.01 ; b_emb = zeros(embSize)
    w_emb = jax.random.normal(kw, (inputDimSize, embSize), dtype=jnp.float32) * 0.01
    b_emb = jnp.zeros((embSize,), dtype=jnp.float32)

    # One-time parameter prep (hoisted out of the forward pass).
    w_prep, b_prep = jax.block_until_ready(prepare_embedding_params(w_emb, b_emb))

    # Multi-hot style input (EHR code-count vectors), stored as f32.
    x = jax.random.bernoulli(kx, p=0.05, shape=(16, inputDimSize)).astype(jnp.float32)

    # Small batch: single row block, 2 parallel column blocks.
    y = jax.block_until_ready(custom_embedding(x, w_prep, b_prep, emb=embSize))
    y_ref = custom_embedding_ref(x, w_emb, b_emb)
    assert y.shape == (16, embSize)
    # bf16 weights/output with f32 MXU accumulation: loose abs tol vs f32 ref.
    assert jnp.allclose(y.astype(jnp.float32), y_ref, atol=1e-2)

    # Larger, non-tile-multiple batch: exercises the multi-step row-tiled
    # path with a ragged boundary block (300 = 2*128 + 44), no materialized pad.
    x2 = jax.random.bernoulli(kx2, p=0.05, shape=(300, inputDimSize)).astype(jnp.float32)
    y2 = jax.block_until_ready(
        custom_embedding(x2, w_prep, b_prep, emb=embSize, tm=128)
    )
    y2_ref = custom_embedding_ref(x2, w_emb, b_emb)
    assert y2.shape == (300, embSize)
    assert jnp.allclose(y2.astype(jnp.float32), y2_ref, atol=1e-2)

    print("KERNEL_OK")
</pallas_src>

<mosaic_0001>
module attributes {stable_mosaic.version = 11 : i64} {
  func.func @_emb_kernel(%arg0: i32, %arg1: memref<16x4894xf32, #tpu.memory_space<vmem>>, %arg2: memref<4894x128xbf16, #tpu.memory_space<vmem>>, %arg3: memref<1x128xf32, #tpu.memory_space<vmem>>, %arg4: memref<16x128xbf16, #tpu.memory_space<vmem>>) attributes {dimension_semantics = [#tpu.dimension_semantics<parallel>], iteration_bounds = array<i64: 2>, scalar_prefetch = 0 : i64, scratch_operands = 0 : i64, tpu.core_type = #tpu.core_type<tc>, window_params = [{pipeline_mode = #tpu.pipeline_mode<synchronous>, transform_indices = @transform_0, window_bounds = array<i64: 16, 4894>}, {transform_indices = @transform_1, window_bounds = array<i64: 4894, 128>}, {transform_indices = @transform_2, window_bounds = array<i64: 1, 128>}, {transform_indices = @transform_3, window_bounds = array<i64: 16, 128>}]} {
    %c0 = arith.constant 0 : index
    %c0_0 = arith.constant 0 : index
    %0 = vector.load %arg1[%c0, %c0_0] : memref<16x4894xf32, #tpu.memory_space<vmem>>, vector<16x4894xf32>
    %1 = arith.truncf %0 : vector<16x4894xf32> to vector<16x4894xbf16>
    %c0_1 = arith.constant 0 : index
    %c0_2 = arith.constant 0 : index
    %2 = vector.load %arg2[%c0_1, %c0_2] : memref<4894x128xbf16, #tpu.memory_space<vmem>>, vector<4894x128xbf16>
    %cst = arith.constant dense<0.000000e+00> : vector<16x128xf32>
    %3 = tpu.matmul %1, %2, %cst {dimension_numbers = #tpu.dot_dimension_numbers<[1], [0], [0], [1], [0, 0, 1, 1], [], []>} : vector<16x4894xbf16>, vector<4894x128xbf16>, vector<16x128xf32> -> vector<16x128xf32>
    %c0_3 = arith.constant 0 : index
    %c0_4 = arith.constant 0 : index
    %4 = vector.load %arg3[%c0_3, %c0_4] : memref<1x128xf32, #tpu.memory_space<vmem>>, vector<1x128xf32>
    %5 = vector.broadcast %4 : vector<1x128xf32> to vector<16x128xf32>
    %6 = arith.addf %3, %5 : vector<16x128xf32>
    %7 = math.tanh %6 : vector<16x128xf32>
    %8 = arith.truncf %7 : vector<16x128xf32> to vector<16x128xbf16>
    %c0_5 = arith.constant 0 : index
    %c0_6 = arith.constant 0 : index
    %9 = vector.load %arg4[%c0_5, %c0_6] : memref<16x128xbf16, #tpu.memory_space<vmem>>, vector<16x128xbf16>
    tpu.vector_store %arg4[%c0_5, %c0_6], %8 {strides = array<i32>} : memref<16x128xbf16, #tpu.memory_space<vmem>>, vector<16x128xbf16>,
    return
  }
  func.func @transform_0(%arg0: i32) -> (i32, i32) {
    %c0_i32 = arith.constant 0 : i32
    %c0_i32_0 = arith.constant 0 : i32
    %c0_i32_1 = arith.constant 0 : i32
    return %c0_i32, %c0_i32_0 : i32, i32
  }
  func.func @transform_1(%arg0: i32) -> (i32, i32) {
    %c0_i32 = arith.constant 0 : i32
    %c0_i32_0 = arith.constant 0 : i32
    return %c0_i32, %arg0 : i32, i32
  }
  func.func @transform_2(%arg0: i32) -> (i32, i32) {
    %c0_i32 = arith.constant 0 : i32
    %c0_i32_0 = arith.constant 0 : i32
    return %c0_i32, %arg0 : i32, i32
  }
  func.func @transform_3(%arg0: i32) -> (i32, i32) {
    %c0_i32 = arith.constant 0 : i32
    %c0_i32_0 = arith.constant 0 : i32
    return %c0_i32, %arg0 : i32, i32
  }
}

</mosaic_0001>

<bundles_post_ra>
// kernel: tpu_custom_call.1
= control target key start
LH: loop header
LB: loop body
LE: loop exit
PB: predicated region body
PF: predicated region fallthrough
CT: control target
= control target key end

     0   :  { %8 = vsyncpa [#allocation3], 0  ;;  %s5665_s0 = inlined_call_operand.hbm [shape: f32[16,4894], index: 0, kind: input, shape index: {}]   ;;  %s5666_s1 = inlined_call_operand.hbm [shape: bf16[4894,256], index: 1, kind: input, shape index: {}]   ;;  %s5667_s2 = inlined_call_operand.hbm [shape: f32[1,256], index: 2, kind: input, shape index: {}]   ;;  %s5668_s3 = inlined_call_operand.hbm [shape: bf16[16,256], index: 3, kind: output, shape index: {}]  }
   0x1   :  { %9 = vsyncpa [#allocation6], 0 }
   0x2   :  { %11 = vsyncpa [#allocation6 + $0x1], 0 }
   0x3   :  { %12 = vsyncpa [#allocation4], 0 }
   0x4   :  { %14 = vsyncpa [#allocation4 + $0x1], 0  ;;  %s5090_s12 = smov 0   ;;  %s5092_s13 = smov 0  }
   0x5   :  { %s5094_s14 = smov 0   ;;  %s5096_s15 = smov 0  }
   0x6 LB: > { %s5111_s16 = sadd.s32 1, %s5054_s15   ;;  %s48_s17 = sadd.s32 1, %s5050_s14  ;;  %s5054_s15 = sphi %s5096_s15, %s5694_s15   ;;  %s5050_s14 = sphi %s5094_s14, %s5693_s14   ;;  %s5046_s13 = sphi %s5092_s13, %s5692_s13   ;;  %s5042_s12 = sphi %s5090_s12, %s5691_s12  }
   0x7   : > { %s45_s18 = ssub.s32 %s5054_s15, %s5111_s16  ;;  %p55_p0 = scmp.ne.s32.totalorder %s5050_s14, %s5046_s13 }
   0x8   : > { %p46_p1 = scmp.eq.s32.totalorder %s45_s18, 0  ;;  %p56_p2 = scmp.eq.s32.totalorder %s5054_s15, 0 }
   0x9   : > { %p4548_p4 = scmp.lt.s32.totalorder %s5054_s15, 2  ;;  %s150_s20 = sand.u32 1, %s5054_s15  }
   0xa   : > { %s5122_s19 = scalar_select %p46_p1, %s5050_s14, %s48_s17  }
   0xb   : > { %p57_p5 = por %p56_p2, %p55_p0  ;;  %s152_s21 = sand.u32 1, %s5050_s14  }
   0xc   : > { %s4520_s22 = smul.u32 2448, %s152_s21  ;;  %s3765_s23 = sshll.u32 %s5054_s15, 6 }
   0xd   : > { %s5135_s26 = scalar_lea.hbm %s5666_s1, %s3765_s23  ;;  %p5137_p6 = pnand %p4548_p4, %p57_p5 }
   0xe   : > { %s154_s28 = scalar_lea.vmem [#allocation5], %s4520_s22  ;;  %s5143_s30 = scalar_lea.sflag [#allocation6], %s150_s20 }
   0xf   : > { %s160_s29 = sshll.u32 %s154_s28, 4  ;;  %s4904_s4 = scalar_lea.hbm %s5135_s26, 39168  ;;  %s5141_s29 = int_to_ptr.vmem [resolvable:$true] %s160_s29 }
  0x10   : > { %p4905_p7 = scmp.ne.s32.totalorder %s5135_s26, %s4904_s4  ;;  %p5670_p8 = pneg %p5137_p6 }
  0x11   : > { %s4909_s7 = scalar_lea.hbm %s5666_s1, 78336  ;;  %p4910_p11 = scmp.lt.s32.totalorder %s5135_s26, %s5666_s1 }
  0x12   : > { %p4907_p9 = pnand %p5670_p8, %p4905_p7  ;;  %p4911_p12 = scmp.lt.s32.totalorder %s4909_s7, %s4904_s4 }
  0x14   : > { %p4908_p10 = pneg %p4907_p9  ;;  %p4912_p13 = por %p4911_p12, %p4910_p11 }
  0x16   : > { %p4913_p1 = pnand %p4912_p13, %p4908_p10 }
  0x18   : > { %4916 = shalt.err (!%p4913_p1)
}
  0x19   : > { %s4917_s10 = scalar_lea.vmem %s5141_s29, 39168  ;;  %s5056_s11 = smov [#allocation5]  }
  0x1a   : > { %p4918_p2 = scmp.ne.s32.totalorder %s5141_s29, %s4917_s10  ;;  %s4922_s17 = sshll.u32 %s5056_s11, 4  ;;  %s4923_s17 = int_to_ptr.vmem [resolvable:$false] %s4922_s17 }
  0x1b   : > { %s4924_s18 = scalar_lea.vmem %s4923_s17, 78336  ;;  %p4925_p7 = scmp.lt.s32.totalorder %s5141_s29, %s4923_s17 }
  0x1c   : > { %p4920_p4 = pnand %p4918_p2, %p5670_p8  ;;  %p4926_p9 = scmp.lt.s32.totalorder %s4924_s18, %s4917_s10 }
  0x1e   : > { %p4921_p5 = pneg %p4920_p4  ;;  %p4927_p3 = por %p4926_p9, %p4925_p7 }
  0x20   : > { %p4928_p11 = pnand %p4927_p3, %p4921_p5 }
  0x22   : > { %4931 = shalt.err (!%p4928_p11)
}
  0x23   : > { %s5057_s20 = smov 128   ;;  %s5058_s22 = smov 64  }
  0x24   : > { %s5059_s23 = smov 4   ;;  %s5171_s24 = sadd.s32 4294967295, %s5054_s15  }
  0x25   : > { %4539 = dma.hbm_to_vmem [thread:$0]  (!%p5137_p6), %s5135_s26, 39168, %s5141_s29, %s5143_s30, %s5057_s20, %s5058_s22, %s5059_s23  }
  0x26   : > { %s3761_s25 = sadd.s32 4294967294, %s5054_s15   ;;  %p61_p3 = scmp.ne.s32.totalorder %s5046_s13, %s5042_s12 }
  0x27   : > { %p5669_p10 = scmp.eq.s32.totalorder %s5171_s24, 0  ;;  %p111_p12 = scmp.eq.s32.totalorder %s5171_s24, 1 }
  0x28   : > { %p117_p13 = scmp.eq.s32.totalorder %s3761_s25, 1  ;;  %p3762_p1 = scmp.ge.s32.totalorder %s5054_s15, 1 }
  0x29   : > { %p5181_p2 = por %p5669_p10, %p61_p3  ;;  %p5188_p4 = por %p111_p12, %p55_p0 }
  0x2a   : > { %p5192_p5 = por %p117_p13, %p61_p3  ;;  %p124_p7 = scmp.lt.s32.totalorder %s5054_s15, 3 }
  0x2b   : > { %s5674_s28 = scalar_select %p5181_p2, 1, 0 }
  0x2c   : > { %s5675_s26 = scalar_select %p5188_p4, 1, 0 }
  0x2d   : > { %s5676_s29 = scalar_select %p5192_p5, 1, 0 }
  0x2e   : > { %p5197_p9 = pnand %p3762_p1, %p124_p7  ;;  %s5060_s5 = smov [#allocation2]  }
  0x2f   : > { %s136_s6 = sshll.u32 %s5060_s5, 4  ;;  %s3766_s7 = sshll.u32 %s5054_s15, 4  ;;  %s137_s6 = int_to_ptr.vmem [resolvable:$true] %s136_s6 }
  0x30   : > { %p4532_p11 = pneg %p5197_p9  ;;  %s5213_s11 = scalar_lea.hbm %s5667_s2, %s3766_s7 }
  0x31   : > { %s173_s17 = scalar_lea.vmem [#allocation7], %s152_s21  ;;  %s4943_s20 = scalar_lea.vmem %s137_s6, 9984 }
  0x32   : > { %p5206_p0 = pnand %p4532_p11, %p5669_p10  ;;  %s180_s18 = sshll.u32 %s173_s17, 4  ;;  %s5217_s18 = int_to_ptr.vmem [resolvable:$true] %s180_s18 }
  0x33   : > { %p4944_p12 = scmp.ne.s32.totalorder %s137_s6, %s4943_s20  ;;  %p4951_p7 = scmp.lt.s32.totalorder %s137_s6, %s137_s6 }
  0x34   : > { %p4934_p3 = pneg %p5206_p0  ;;  %p4952_p11 = scmp.lt.s32.totalorder %s4943_s20, %s4943_s20 }
  0x36   : > { %p4946_p13 = pnand %p4944_p12, %p4934_p3  ;;  %p4953_p10 = por %p4952_p11, %p4951_p7 }
  0x38   : > { %p4947_p1 = pneg %p4946_p13 }
  0x3a   : > { %p4954_p8 = pnand %p4953_p10, %p4947_p1 }
  0x3c   : > { %4957 = shalt.err (!%p4954_p8)
}
  0x3d   : > { %s5061_s22 = smov 4992   ;;  %s5062_s21 = smov 312  }
  0x3e   : > { %4535 = dma.hbm_to_vmem [thread:$0]  (!%p5206_p0), %s5665_s0, 9984, %s137_s6, [#allocation3], %s5061_s22, %s5061_s22, %s5062_s21  }
  0x3f   : > { %s4958_s5 = scalar_lea.hbm %s5213_s11, 16  ;;  %p5679_p12 = pneg %p5137_p6 }
  0x40   : > { %p4959_p3 = scmp.ne.s32.totalorder %s5213_s11, %s4958_s5  ;;  %s4963_s10 = scalar_lea.hbm %s5667_s2, 32 }
  0x41   : > { %p4964_p8 = scmp.lt.s32.totalorder %s5213_s11, %s5667_s2  ;;  %p4965_p10 = scmp.lt.s32.totalorder %s4963_s10, %s4958_s5 }
  0x42   : > { %p4961_p13 = pnand %p4959_p3, %p5679_p12 }
  0x43   : > { %p4966_p1 = por %p4965_p10, %p4964_p8 }
  0x44   : > { %p4962_p7 = pneg %p4961_p13 }
  0x46   : > { %p4967_p11 = pnand %p4966_p1, %p4962_p7 }
  0x48   : > { %4970 = shalt.err (!%p4967_p11)
}
  0x49   : > { %s4971_s6 = scalar_lea.vmem %s5217_s18, 16  ;;  %p5680_p3 = pmov %p5679_p12 }
  0x4a   : > { %p4972_p0 = scmp.ne.s32.totalorder %s5217_s18, %s4971_s6  ;;  %s5063_s8 = smov [#allocation7]  }
  0x4b   : > { %s4976_s22 = sshll.u32 %s5063_s8, 4  ;;  %s4977_s22 = int_to_ptr.vmem [resolvable:$false] %s4976_s22 }
  0x4c   : > { %p4974_p12 = pnand %p4972_p0, %p5680_p3  ;;  %s4978_s21 = scalar_lea.vmem %s4977_s22, 32 }
  0x4d   : > { %p4979_p5 = scmp.lt.s32.totalorder %s5217_s18, %s4977_s22  ;;  %p4980_p4 = scmp.lt.s32.totalorder %s4978_s21, %s4971_s6 }
  0x4e   : > { %p4975_p13 = pneg %p4974_p12 }
  0x4f   : > { %p4981_p2 = por %p4980_p4, %p4979_p5 }
  0x51   : > { %p4982_p8 = pnand %p4981_p2, %p4975_p13 }
  0x53   : > { %4985 = shalt.err (!%p4982_p8)
}
  0x54   : > { %4542 = dma.hbm_to_vmem [thread:$0]  (!%p5137_p6), %s5213_s11, 16, %s5217_s18, %s5143_s30  }
  0x55   : > { %189 = sbr.rel (%p5197_p9) target bundleno = 655 (0x28f), region = 32 }
  0x5a   : > { %p5681_p7 = scmp.eq.s32.totalorder %s5171_s24, 0 }
  0x5c   : > { %5029 = dma.done.wait (%p5681_p7), [#allocation3], 9984   ;;  %p5682_p10 = pmov %p5681_p7 }
  0x5d   : > { %s195_s23 = sand.u32 1, %s5171_s24   ;;  %s5257_s25 = sand.u32 1, %s5046_s13  }
  0x5e   : > { %5031 = vsyncadd (%p5682_p10), [#allocation3], 4294957312  ;;  %s4521_s27 = smul.u32 2448, %s5257_s25  ;;  %s196_s5 = scalar_lea.sflag [#allocation6], %s195_s23 }
  0x5f   : > { %p5683_p6 = scmp.ne.s32.totalorder %s5674_s28, 0 }
  0x60   : > { %s5260_s7 = scalar_lea.vmem [#allocation5], %s4521_s27 }
  0x61   : > { %5033 = dma.done.wait (%p5683_p6), %s196_s5, 39184  }
  0x62   : > { %5035 = vsyncadd (%p5683_p6), %s196_s5, 4294928112  ;;  %v4594_v0 = vld [vmem:[%s5260_s7 + $0x78] sm:$0xff]   ;;  %v4598_v4 = vld [vmem:[%s5260_s7 + $0x70] sm:$0xff]   ;;  %vm5065_vm0 = vmmov 0   ;;  %vm2810_vm1 = vcmask 1046528   ;;  %vm2806_vm2 = vcmask 244736  }
  0x63   : > { %v4595_v1 = vld [vmem:[%s5260_s7 + $0x38] sm:$0xff]   ;;  %4091 = vmatprep.subr.bf16.mxu0 %v4594_v0  ;;  %v4599_v5 = vld [vmem:[%s5260_s7 + $0x30] sm:$0xff]   ;;  %v4602_v8 = vld [vmem:[%s5260_s7 + $0x68] sm:$0xff]   ;;  %s207_s30 = scalar_lea.vmem [#allocation7], %s5257_s25  ;;  %s3769_s28 = sshll.u32 %s5257_s25, 3 }
  0x64   : > { %v4596_v2 = vld [vmem:[%s5260_s7 + $0xf8] sm:$0xff]   ;;  %4092 = vmatpush3.bf16.msra.mxu0 %v4595_v1  ;;  %v4600_v6 = vld [vmem:[%s5260_s7 + $0xf0] sm:$0xff]   ;;  %v4603_v9 = vld [vmem:[%s5260_s7 + $0x28] sm:$0xff]   ;;  %s4081_s4 = sshll.u32 %s5171_s24, 6  ;;  %s233_s11 = scalar_lea.vmem [#allocation8], %s3769_s28 }
  0x65   : > { %v4597_v3 = vld [vmem:[%s5260_s7 + $0xb8] sm:$0xff]   ;;  %4113 = vmatprep.subr.bf16.mxu1 %v4596_v2  ;;  %4093 = vmatprep.subr.bf16.mxu0 %v4598_v4  ;;  %v4601_v7 = vld [vmem:[%s5260_s7 + $0xb0] sm:$0xff]   ;;  %v4604_v10 = vld [vmem:[%s5260_s7 + $0xe8] sm:$0xff]   ;;  %s3659_s18 = sshll.u32 %s233_s11, 4  ;;  %s5620_s17 = scalar_lea.hbm %s5668_s3, %s4081_s4  ;;  %s5622_s18 = int_to_ptr.vmem [resolvable:$true] %s3659_s18 }
  0x66   : > { %4114 = vmatpush3.bf16.msra.mxu1 %v4597_v3  ;;  %v4605_v11 = vld [vmem:[%s5260_s7 + $0xa8] sm:$0xff]   ;;  %v4606_v12 = vld [vmem:[%s5260_s7 + $0x60] sm:$0xff]   ;;  %v4610_v16 = vld [vmem:[%s5260_s7 + $0x58] sm:$0xff]   ;;  %s3647_s20 = scalar_lea.sflag [#allocation4], %s5257_s25  ;;  %s4986_s6 = scalar_lea.vmem %s5622_s18, 128 }
  0x67   : > { %4115 = vmatprep.subr.bf16.mxu1 %v4600_v6  ;;  %v4607_v13 = vld [vmem:[%s5260_s7 + $0x20] sm:$0xff]   ;;  %v4611_v17 = vld [vmem:[%s5260_s7 + $0x18] sm:$0xff]   ;;  %v4614_v20 = vld [vmem:[%s5260_s7 + $0x50] sm:$0xff]   ;;  %p4987_p2 = scmp.ne.s32.totalorder %s5622_s18, %s4986_s6  ;;  %p5688_p4 = scmp.ne.s32.totalorder %s5675_s26, 0 }
  0x68   : > { %4094 = vmatpush3.bf16.msra.mxu0 %v4599_v5  ;;  %v4608_v14 = vld [vmem:[%s5260_s7 + $0xe0] sm:$0xff]   ;;  %v4612_v18 = vld [vmem:[%s5260_s7 + $0xd8] sm:$0xff]   ;;  %v4615_v21 = vld [vmem:[%s5260_s7 + $0x10] sm:$0xff]   ;;  %s5066_s24 = smov [#allocation8]  }
  0x69   : > { %4095 = vmatprep.subr.bf16.mxu0 %v4602_v8  ;;  %v4609_v15 = vld [vmem:[%s5260_s7 + $0xa0] sm:$0xff]   ;;  %v4613_v19 = vld [vmem:[%s5260_s7 + $0x98] sm:$0xff]   ;;  %v4616_v22 = vld [vmem:[%s5260_s7 + $0xd0] sm:$0xff]   ;;  %p4988_p5 = pnand %p4987_p2, %p5688_p4  ;;  %s4990_s8 = sshll.u32 %s5066_s24, 4  ;;  %s4991_s8 = int_to_ptr.vmem [resolvable:$false] %s4990_s8 }
  0x6a   : > { %4116 = vmatpush3.bf16.msra.mxu1 %v4601_v7  ;;  %v4617_v23 = vld [vmem:[%s5260_s7 + $0x90] sm:$0xff]   ;;  %v4618_v24 = vld [vmem:[%s5260_s7 + $0x48] sm:$0xff]   ;;  %v4622_v28 = vld [vmem:[%s5260_s7 + $0x40] sm:$0xff]   ;;  %s4992_s22 = scalar_lea.vmem %s4991_s8, 256  ;;  %p4993_p1 = scmp.lt.s32.totalorder %s5622_s18, %s4991_s8 }
  0x6b   : > { %4117 = vmatprep.subr.bf16.mxu1 %v4604_v10  ;;  %v4619_v25 = vld [vmem:[%s5260_s7 + $0x8] sm:$0xff]   ;;  %v4623_v29 = vld [vmem:[%s5260_s7] sm:$0xff]   ;;  %v4626_v38 = vld [vmem:[%s5260_s7 + $0x178] sm:$0xff]   ;;  %p4989_p9 = pneg %p4988_p5  ;;  %p4994_p11 = scmp.lt.s32.totalorder %s4992_s22, %s4986_s6 }
  0x6c   : > { %4096 = vmatpush3.bf16.msra.mxu0 %v4603_v9  ;;  %v4620_v26 = vld [vmem:[%s5260_s7 + $0xc8] sm:$0xff]   ;;  %v4624_v30 = vld [vmem:[%s5260_s7 + $0xc0] sm:$0xff]   ;;  %v4627_v42 = vld [vmem:[%s5260_s7 + $0x138] sm:$0xff]  }
  0x6d   : > { %4097 = vmatprep.subr.bf16.mxu0 %v4606_v12  ;;  %v4621_v27 = vld [vmem:[%s5260_s7 + $0x88] sm:$0xff]   ;;  %v275_v32 = vld [vmem:[#allocation2 + $0x140] sm:$0xff]  ;;  %v277_v40 = vld [vmem:[#allocation2 + $0x150] sm:$0xff]  ;;  %p4995_p0 = por %p4994_p11, %p4993_p1 }
  0x6e   : > { %4118 = vmatpush3.bf16.msra.mxu1 %v4605_v11  ;;  %v236_v31 = vld [vmem:[#allocation2 + $0x8] sm:$0xff]  ;;  %v4625_v34 = vld [vmem:[%s5260_s7 + $0x80] sm:$0xff]   ;;  %v274_v36 = vld [vmem:[#allocation2 + $0x138] sm:$0xff] }
  0x6f   : > { %4119 = vmatprep.subr.bf16.mxu1 %v4608_v14  ;;  %v314_v33 = vpack.c.bf16 %v275_v32, %v236_v31  ;;  %v235_v35 = vld [vmem:[#allocation2] sm:$0xff]  ;;  %v238_v39 = vld [vmem:[#allocation2 + $0x18] sm:$0xff]  ;;  %v237_v43 = vld [vmem:[#allocation2 + $0x10] sm:$0xff]  ;;  %p4996_p3 = pnand %p4995_p0, %p4989_p9 }
  0x70   : > { %4098 = vmatpush3.bf16.msra.mxu0 %v4607_v13  ;;  %v313_v37 = vpack.c.bf16 %v274_v36, %v235_v35  ;;  %v316_v41 = vpack.c.bf16 %v277_v40, %v238_v39  ;;  %v276_v44 = vld [vmem:[#allocation2 + $0x148] sm:$0xff]  ;;  %v4630_v48 = vld [vmem:[%s5260_s7 + $0x170] sm:$0xff]   ;;  %v4638_v56 = vld [vmem:[%s5260_s7 + $0x160] sm:$0xff]  }
  0x71   : > { %4099 = vmatprep.subr.bf16.mxu0 %v4610_v16  ;;  %2846 = vmatprep.mubr.bf16.mxu0 %v314_v33  ;;  %v315_v45 = vpack.c.bf16 %v276_v44, %v237_v43  ;;  %v4628_v46 = vld [vmem:[%s5260_s7 + $0x1f8] sm:$0xff]   ;;  %v4631_v49 = vld [vmem:[%s5260_s7 + $0x130] sm:$0xff]   ;;  %v4634_v52 = vld [vmem:[%s5260_s7 + $0x168] sm:$0xff]  }
  0x72   : > { %4120 = vmatpush3.bf16.msra.mxu1 %v4609_v15  ;;  %2887 = vmatprep.mubr.bf16.mxu1 %v316_v41  ;;  %v4629_v47 = vld [vmem:[%s5260_s7 + $0x1b8] sm:$0xff]   ;;  %v4632_v50 = vld [vmem:[%s5260_s7 + $0x1f0] sm:$0xff]   ;;  %v4635_v53 = vld [vmem:[%s5260_s7 + $0x128] sm:$0xff]  }
  0x73   : > { %4121 = vmatprep.subr.bf16.mxu1 %v4612_v18  ;;  %v4633_v51 = vld [vmem:[%s5260_s7 + $0x1b0] sm:$0xff]   ;;  %v4636_v54 = vld [vmem:[%s5260_s7 + $0x1e8] sm:$0xff]   ;;  %v4639_v57 = vld [vmem:[%s5260_s7 + $0x120] sm:$0xff]  }
  0x74   : > { %4100 = vmatpush3.bf16.msra.mxu0 %v4611_v17  ;;  %v4637_v55 = vld [vmem:[%s5260_s7 + $0x1a8] sm:$0xff]   ;;  %v4640_v58 = vld [vmem:[%s5260_s7 + $0x1e0] sm:$0xff]   ;;  %v4642_v60 = vld [vmem:[%s5260_s7 + $0x158] sm:$0xff]  }
  0x75   : > { %4101 = vmatprep.subr.bf16.mxu0 %v4614_v20  ;;  %v4641_v59 = vld [vmem:[%s5260_s7 + $0x1a0] sm:$0xff]   ;;  %v4643_v61 = vld [vmem:[%s5260_s7 + $0x118] sm:$0xff]   ;;  %v4646_v0 = vld [vmem:[%s5260_s7 + $0x150] sm:$0xff]  }
  0x76   : > { %4122 = vmatpush3.bf16.msra.mxu1 %v4613_v19  ;;  %v4644_v62 = vld [vmem:[%s5260_s7 + $0x1d8] sm:$0xff]   ;;  %v4647_v1 = vld [vmem:[%s5260_s7 + $0x110] sm:$0xff]   ;;  %v4650_v4 = vld [vmem:[%s5260_s7 + $0x148] sm:$0xff]  }
  0x77   : > { %4123 = vmatprep.subr.bf16.mxu1 %v4616_v22  ;;  %v4645_v63 = vld [vmem:[%s5260_s7 + $0x198] sm:$0xff]   ;;  %v4648_v2 = vld [vmem:[%s5260_s7 + $0x1d0] sm:$0xff]   ;;  %v4651_v5 = vld [vmem:[%s5260_s7 + $0x108] sm:$0xff]  }
  0x78   : > { %4102 = vmatpush3.bf16.msra.mxu0 %v4615_v21  ;;  %v4649_v3 = vld [vmem:[%s5260_s7 + $0x190] sm:$0xff]   ;;  %v4652_v6 = vld [vmem:[%s5260_s7 + $0x1c8] sm:$0xff]   ;;  %v4654_v8 = vld [vmem:[%s5260_s7 + $0x140] sm:$0xff]  }
  0x79   : > { %4103 = vmatprep.subr.bf16.mxu0 %v4618_v24  ;;  %v4653_v7 = vld [vmem:[%s5260_s7 + $0x188] sm:$0xff]   ;;  %v4655_v9 = vld [vmem:[%s5260_s7 + $0x100] sm:$0xff]   ;;  %v4658_v18 = vld [vmem:[%s5260_s7 + $0x278] sm:$0xff]  }
  0x7a   : > { %4124 = vmatpush3.bf16.msra.mxu1 %v4617_v23  ;;  %v4656_v10 = vld [vmem:[%s5260_s7 + $0x1c0] sm:$0xff]   ;;  %v240_v11 = vld [vmem:[#allocation2 + $0x28] sm:$0xff]  ;;  %v278_v16 = vld [vmem:[#allocation2 + $0x158] sm:$0xff] }
  0x7b   : > { %4125 = vmatprep.subr.bf16.mxu1 %v4620_v26  ;;  %v279_v12 = vld [vmem:[#allocation2 + $0x160] sm:$0xff]  ;;  %v242_v19 = vld [vmem:[#allocation2 + $0x38] sm:$0xff]  ;;  %v281_v20 = vld [vmem:[#allocation2 + $0x170] sm:$0xff] }
  0x7c   : > { %4104 = vmatpush3.bf16.msra.mxu0 %v4619_v25  ;;  %v318_v13 = vpack.c.bf16 %v279_v12, %v240_v11  ;;  %v4657_v14 = vld [vmem:[%s5260_s7 + $0x180] sm:$0xff]   ;;  %v320_v21 = vpack.c.bf16 %v281_v20, %v242_v19  ;;  %v4659_v22 = vld [vmem:[%s5260_s7 + $0x238] sm:$0xff]   ;;  %v4665_v31 = vld [vmem:[%s5260_s7 + $0x2b0] sm:$0xff]  }
  0x7d   : > { %4105 = vmatprep.subr.bf16.mxu0 %v4622_v28  ;;  %v239_v15 = vld [vmem:[#allocation2 + $0x20] sm:$0xff]  ;;  %v241_v23 = vld [vmem:[#allocation2 + $0x30] sm:$0xff]  ;;  %v280_v24 = vld [vmem:[#allocation2 + $0x168] sm:$0xff] }
  0x7e   : > { %4126 = vmatpush3.bf16.msra.mxu1 %v4621_v27  ;;  %v317_v17 = vpack.c.bf16 %v278_v16, %v239_v15  ;;  %v319_v25 = vpack.c.bf16 %v280_v24, %v241_v23  ;;  %v4660_v26 = vld [vmem:[%s5260_s7 + $0x2f8] sm:$0xff]   ;;  %v4662_v28 = vld [vmem:[%s5260_s7 + $0x270] sm:$0xff]   ;;  %v4666_v32 = vld [vmem:[%s5260_s7 + $0x268] sm:$0xff]  }
  0x7f   : > { %4127 = vmatprep.subr.bf16.mxu1 %v4624_v30  ;;  %v4661_v27 = vld [vmem:[%s5260_s7 + $0x2b8] sm:$0xff]   ;;  %v4664_v30 = vld [vmem:[%s5260_s7 + $0x2f0] sm:$0xff]   ;;  %v4667_v33 = vld [vmem:[%s5260_s7 + $0x228] sm:$0xff]  }
  0x80   : > { %4106 = vmatpush3.bf16.msra.mxu0 %v4623_v29  ;;  %v4663_v29 = vld [vmem:[%s5260_s7 + $0x230] sm:$0xff]   ;;  %v4669_v35 = vld [vmem:[%s5260_s7 + $0x2a8] sm:$0xff]   ;;  %v4670_v36 = vld [vmem:[%s5260_s7 + $0x260] sm:$0xff]  }
  0x81   : > { %4135 = vmatprep.subr.bf16.mxu0 %v4626_v38  ;;  %v4672_v38 = vld [vmem:[%s5260_s7 + $0x2e0] sm:$0xff]   ;;  %v4674_v40 = vld [vmem:[%s5260_s7 + $0x258] sm:$0xff]   ;;  %v4678_v44 = vld [vmem:[%s5260_s7 + $0x250] sm:$0xff]  }
  0x82   : > { %4128 = vmatpush3.bf16.msra.mxu1 %v4625_v34  ;;  %v4668_v34 = vld [vmem:[%s5260_s7 + $0x2e8] sm:$0xff]   ;;  %v4673_v39 = vld [vmem:[%s5260_s7 + $0x2a0] sm:$0xff]   ;;  %v4675_v41 = vld [vmem:[%s5260_s7 + $0x218] sm:$0xff]  }
  0x83   : > { %2847 = vmatmul.mubr.bf16.vlgmr.msra.gmra.mxu0 %v313_v37  ;;  %4157 = vmatprep.subr.bf16.mxu1 %v4628_v46  ;;  %v4671_v37 = vld [vmem:[%s5260_s7 + $0x220] sm:$0xff]   ;;  %v4677_v43 = vld [vmem:[%s5260_s7 + $0x298] sm:$0xff]   ;;  %v4680_v46 = vld [vmem:[%s5260_s7 + $0x2d0] sm:$0xff]  }
  0x84   : > { %4136 = vmatpush3.bf16.msra.mxu0 %v4627_v42  ;;  %2928 = vmatprep.mubr.bf16.mxu0 %v318_v13  ;;  %v4676_v42 = vld [vmem:[%s5260_s7 + $0x2d8] sm:$0xff]   ;;  %v4697_v11 = vld [vmem:[%s5260_s7 + $0x3b0] sm:$0xff]   ;;  %v4698_v12 = vld [vmem:[%s5260_s7 + $0x368] sm:$0xff]  }
  0x85   : > { %2888 = vmatmul.mubr.bf16.vlgmr.msra.gmra.mxu1 %v315_v45  ;;  %4137 = vmatprep.subr.bf16.mxu0 %v4630_v48  ;;  %v4679_v45 = vld [vmem:[%s5260_s7 + $0x210] sm:$0xff]   ;;  %v4682_v48 = vld [vmem:[%s5260_s7 + $0x248] sm:$0xff]   ;;  %v4702_v16 = vld [vmem:[%s5260_s7 + $0x360] sm:$0xff]  }
  0x86   : > { %4158 = vmatpush3.bf16.msra.mxu1 %v4629_v47  ;;  %2969 = vmatprep.mubr.bf16.mxu1 %v320_v21  ;;  %v4681_v47 = vld [vmem:[%s5260_s7 + $0x290] sm:$0xff]   ;;  %v4699_v13 = vld [vmem:[%s5260_s7 + $0x328] sm:$0xff]   ;;  %v4705_v19 = vld [vmem:[%s5260_s7 + $0x3a0] sm:$0xff]  }
  0x87   : > { %4159 = vmatprep.subr.bf16.mxu1 %v4632_v50  ;;  %v4684_v50 = vld [vmem:[%s5260_s7 + $0x2c8] sm:$0xff]   ;;  %v4706_v20 = vld [vmem:[%s5260_s7 + $0x358] sm:$0xff]   ;;  %v4710_v24 = vld [vmem:[%s5260_s7 + $0x350] sm:$0xff]  }
  0x88   : > { %4138 = vmatpush3.bf16.msra.mxu0 %v4631_v49  ;;  %v4683_v49 = vld [vmem:[%s5260_s7 + $0x208] sm:$0xff]   ;;  %v4707_v21 = vld [vmem:[%s5260_s7 + $0x318] sm:$0xff]  }
  0x89   : > { %4139 = vmatprep.subr.bf16.mxu0 %v4634_v52  ;;  %v4686_v52 = vld [vmem:[%s5260_s7 + $0x240] sm:$0xff]   ;;  %v4701_v15 = vld [vmem:[%s5260_s7 + $0x3a8] sm:$0xff]   ;;  %v4709_v23 = vld [vmem:[%s5260_s7 + $0x398] sm:$0xff]  }
  0x8a   : > { %4160 = vmatpush3.bf16.msra.mxu1 %v4633_v51  ;;  %v4685_v51 = vld [vmem:[%s5260_s7 + $0x288] sm:$0xff]  }
  0x8b   : > { %4161 = vmatprep.subr.bf16.mxu1 %v4636_v54  ;;  %v4688_v54 = vld [vmem:[%s5260_s7 + $0x2c0] sm:$0xff]  }
  0x8c   : > { %4140 = vmatpush3.bf16.msra.mxu0 %v4635_v53  ;;  %v4687_v53 = vld [vmem:[%s5260_s7 + $0x200] sm:$0xff]  }
  0x8d   : > { %4141 = vmatprep.subr.bf16.mxu0 %v4638_v56  ;;  %v283_v56 = vld [vmem:[#allocation2 + $0x180] sm:$0xff] }
  0x8e   : > { %4162 = vmatpush3.bf16.msra.mxu1 %v4637_v55  ;;  %v244_v55 = vld [vmem:[#allocation2 + $0x48] sm:$0xff] }
  0x8f   : > { %4163 = vmatprep.subr.bf16.mxu1 %v4640_v58  ;;  %v4689_v58 = vld [vmem:[%s5260_s7 + $0x280] sm:$0xff]  }
  0x90   : > { %4142 = vmatpush3.bf16.msra.mxu0 %v4639_v57  ;;  %v322_v57 = vpack.c.bf16 %v283_v56, %v244_v55  ;;  %v4729_v55 = vld [vmem:[%s5260_s7 + $0x4b0] sm:$0xff]   ;;  %v4730_v56 = vld [vmem:[%s5260_s7 + $0x468] sm:$0xff]  }
  0x91   : > { %4143 = vmatprep.subr.bf16.mxu0 %v4642_v60  ;;  %v282_v60 = vld [vmem:[#allocation2 + $0x178] sm:$0xff] }
  0x92   : > { %4164 = vmatpush3.bf16.msra.mxu1 %v4641_v59  ;;  %v243_v59 = vld [vmem:[#allocation2 + $0x40] sm:$0xff] }
  0x93   : > { %4165 = vmatprep.subr.bf16.mxu1 %v4644_v62  ;;  %v4690_v62 = vld [vmem:[%s5260_s7 + $0x378] sm:$0xff]  }
  0x94   : > { %4144 = vmatpush3.bf16.msra.mxu0 %v4643_v61  ;;  %v321_v61 = vpack.c.bf16 %v282_v60, %v243_v59  ;;  %v4733_v59 = vld [vmem:[%s5260_s7 + $0x4a8] sm:$0xff]   ;;  %v4734_v60 = vld [vmem:[%s5260_s7 + $0x460] sm:$0xff]  }
  0x95   : > { %4145 = vmatprep.subr.bf16.mxu0 %v4646_v0  ;;  %v285_v0 = vld [vmem:[#allocation2 + $0x190] sm:$0xff] }
  0x96   : > { %4166 = vmatpush3.bf16.msra.mxu1 %v4645_v63  ;;  %v246_v63 = vld [vmem:[#allocation2 + $0x58] sm:$0xff] }
  0x97   : > { %4167 = vmatprep.subr.bf16.mxu1 %v4648_v2  ;;  %v4691_v2 = vld [vmem:[%s5260_s7 + $0x338] sm:$0xff]  }
  0x98   : > { %4146 = vmatpush3.bf16.msra.mxu0 %v4647_v1  ;;  %v324_v1 = vpack.c.bf16 %v285_v0, %v246_v63  ;;  %v4737_v63 = vld [vmem:[%s5260_s7 + $0x4a0] sm:$0xff]   ;;  %v4738_v0 = vld [vmem:[%s5260_s7 + $0x458] sm:$0xff]  }
  0x99   : > { %4147 = vmatprep.subr.bf16.mxu0 %v4650_v4  ;;  %v284_v4 = vld [vmem:[#allocation2 + $0x188] sm:$0xff] }
  0x9a   : > { %4168 = vmatpush3.bf16.msra.mxu1 %v4649_v3  ;;  %v245_v3 = vld [vmem:[#allocation2 + $0x50] sm:$0xff] }
  0x9b   : > { %4169 = vmatprep.subr.bf16.mxu1 %v4652_v6  ;;  %v4692_v6 = vld [vmem:[%s5260_s7 + $0x3f8] sm:$0xff]  }
  0x9c   : > { %4148 = vmatpush3.bf16.msra.mxu0 %v4651_v5  ;;  %v323_v5 = vpack.c.bf16 %v284_v4, %v245_v3  ;;  %v4741_v3 = vld [vmem:[%s5260_s7 + $0x498] sm:$0xff]   ;;  %v4742_v4 = vld [vmem:[%s5260_s7 + $0x450] sm:$0xff]  }
  0x9d   : > { %4149 = vmatprep.subr.bf16.mxu0 %v4654_v8  ;;  %v4694_v8 = vld [vmem:[%s5260_s7 + $0x370] sm:$0xff]  }
  0x9e   : > { %4170 = vmatpush3.bf16.msra.mxu1 %v4653_v7  ;;  %v4693_v7 = vld [vmem:[%s5260_s7 + $0x3b8] sm:$0xff]  }
  0x9f   : > { %4171 = vmatprep.subr.bf16.mxu1 %v4656_v10  ;;  %v4696_v10 = vld [vmem:[%s5260_s7 + $0x3f0] sm:$0xff]  }
  0xa0   : > { %4150 = vmatpush3.bf16.msra.mxu0 %v4655_v9  ;;  %v4695_v9 = vld [vmem:[%s5260_s7 + $0x330] sm:$0xff]  }
  0xa1   : > { %4179 = vmatprep.subr.bf16.mxu0 %v4658_v18  ;;  %v4704_v18 = vld [vmem:[%s5260_s7 + $0x3e0] sm:$0xff]  }
  0xa2   : > { %4172 = vmatpush3.bf16.msra.mxu1 %v4657_v14  ;;  %v4700_v14 = vld [vmem:[%s5260_s7 + $0x3e8] sm:$0xff]  }
  0xa3   : > { %2929 = vmatmul.mubr.bf16.vlgmr.msra.gmra.mxu0 %v317_v17  ;;  %4201 = vmatprep.subr.bf16.mxu1 %v4660_v26  ;;  %v4703_v17 = vld [vmem:[%s5260_s7 + $0x320] sm:$0xff]   ;;  %v4712_v26 = vld [vmem:[%s5260_s7 + $0x3d0] sm:$0xff]  }
  0xa4   : > { %4180 = vmatpush3.bf16.msra.mxu0 %v4659_v22  ;;  %3010 = vmatprep.mubr.bf16.mxu0 %v322_v57  ;;  %v4708_v22 = vld [vmem:[%s5260_s7 + $0x3d8] sm:$0xff]   ;;  %v4731_v57 = vld [vmem:[%s5260_s7 + $0x428] sm:$0xff]  }
  0xa5   : > { %2970 = vmatmul.mubr.bf16.vlgmr.msra.gmra.mxu1 %v319_v25  ;;  %4181 = vmatprep.subr.bf16.mxu0 %v4662_v28  ;;  %v4711_v25 = vld [vmem:[%s5260_s7 + $0x310] sm:$0xff]   ;;  %v4714_v28 = vld [vmem:[%s5260_s7 + $0x348] sm:$0xff]  }
  0xa6   : > { %4202 = vmatpush3.bf16.msra.mxu1 %v4661_v27  ;;  %3051 = vmatprep.mubr.bf16.mxu1 %v324_v1  ;;  %v4713_v27 = vld [vmem:[%s5260_s7 + $0x390] sm:$0xff]   ;;  %v4739_v1 = vld [vmem:[%s5260_s7 + $0x418] sm:$0xff]  }
  0xa7   : > { %4203 = vmatprep.subr.bf16.mxu1 %v4664_v30  ;;  %v4716_v30 = vld [vmem:[%s5260_s7 + $0x3c8] sm:$0xff]  }
  0xa8   : > { %4182 = vmatpush3.bf16.msra.mxu0 %v4663_v29  ;;  %v4715_v29 = vld [vmem:[%s5260_s7 + $0x308] sm:$0xff]  }
  0xa9   : > { %4183 = vmatprep.subr.bf16.mxu0 %v4666_v32  ;;  %v4718_v32 = vld [vmem:[%s5260_s7 + $0x340] sm:$0xff]  }
  0xaa   : > { %4204 = vmatpush3.bf16.msra.mxu1 %v4665_v31  ;;  %v4717_v31 = vld [vmem:[%s5260_s7 + $0x388] sm:$0xff]  }
  0xab   : > { %4205 = vmatprep.subr.bf16.mxu1 %v4668_v34  ;;  %v4720_v34 = vld [vmem:[%s5260_s7 + $0x3c0] sm:$0xff]  }
  0xac   : > { %4184 = vmatpush3.bf16.msra.mxu0 %v4667_v33  ;;  %v4719_v33 = vld [vmem:[%s5260_s7 + $0x300] sm:$0xff]  }
  0xad   : > { %4185 = vmatprep.subr.bf16.mxu0 %v4670_v36  ;;  %v287_v36 = vld [vmem:[#allocation2 + $0x1a0] sm:$0xff] }
  0xae   : > { %4206 = vmatpush3.bf16.msra.mxu1 %v4669_v35  ;;  %v248_v35 = vld [vmem:[#allocation2 + $0x68] sm:$0xff] }
  0xaf   : > { %4207 = vmatprep.subr.bf16.mxu1 %v4672_v38  ;;  %v4721_v38 = vld [vmem:[%s5260_s7 + $0x380] sm:$0xff]  }
  0xb0   : > { %4186 = vmatpush3.bf16.msra.mxu0 %v4671_v37  ;;  %v326_v37 = vpack.c.bf16 %v287_v36, %v248_v35  ;;  %v4761_v35 = vld [vmem:[%s5260_s7 + $0x5b0] sm:$0xff]   ;;  %v4762_v36 = vld [vmem:[%s5260_s7 + $0x568] sm:$0xff]  }
  0xb1   : > { %4187 = vmatprep.subr.bf16.mxu0 %v4674_v40  ;;  %v286_v40 = vld [vmem:[#allocation2 + $0x198] sm:$0xff] }
  0xb2   : > { %4208 = vmatpush3.bf16.msra.mxu1 %v4673_v39  ;;  %v247_v39 = vld [vmem:[#allocation2 + $0x60] sm:$0xff] }
  0xb3   : > { %4209 = vmatprep.subr.bf16.mxu1 %v4676_v42  ;;  %v4722_v42 = vld [vmem:[%s5260_s7 + $0x478] sm:$0xff]  }
  0xb4   : > { %4188 = vmatpush3.bf16.msra.mxu0 %v4675_v41  ;;  %v325_v41 = vpack.c.bf16 %v286_v40, %v247_v39  ;;  %v4765_v39 = vld [vmem:[%s5260_s7 + $0x5a8] sm:$0xff]   ;;  %v4766_v40 = vld [vmem:[%s5260_s7 + $0x560] sm:$0xff]  }
  0xb5   : > { %4189 = vmatprep.subr.bf16.mxu0 %v4678_v44  ;;  %v289_v44 = vld [vmem:[#allocation2 + $0x1b0] sm:$0xff] }
  0xb6   : > { %4210 = vmatpush3.bf16.msra.mxu1 %v4677_v43  ;;  %v250_v43 = vld [vmem:[#allocation2 + $0x78] sm:$0xff] }
  0xb7   : > { %4211 = vmatprep.subr.bf16.mxu1 %v4680_v46  ;;  %v4723_v46 = vld [vmem:[%s5260_s7 + $0x438] sm:$0xff]  }
  0xb8   : > { %4190 = vmatpush3.bf16.msra.mxu0 %v4679_v45  ;;  %v328_v45 = vpack.c.bf16 %v289_v44, %v250_v43  ;;  %v4769_v43 = vld [vmem:[%s5260_s7 + $0x5a0] sm:$0xff]   ;;  %v4770_v44 = vld [vmem:[%s5260_s7 + $0x558] sm:$0xff]  }
  0xb9   : > { %4191 = vmatprep.subr.bf16.mxu0 %v4682_v48  ;;  %v288_v48 = vld [vmem:[#allocation2 + $0x1a8] sm:$0xff] }
  0xba   : > { %4212 = vmatpush3.bf16.msra.mxu1 %v4681_v47  ;;  %v249_v47 = vld [vmem:[#allocation2 + $0x70] sm:$0xff] }
  0xbb   : > { %4213 = vmatprep.subr.bf16.mxu1 %v4684_v50  ;;  %v4724_v50 = vld [vmem:[%s5260_s7 + $0x4f8] sm:$0xff]  }
  0xbc   : > { %4192 = vmatpush3.bf16.msra.mxu0 %v4683_v49  ;;  %v327_v49 = vpack.c.bf16 %v288_v48, %v249_v47  ;;  %v4773_v47 = vld [vmem:[%s5260_s7 + $0x598] sm:$0xff]   ;;  %v4774_v48 = vld [vmem:[%s5260_s7 + $0x550] sm:$0xff]  }
  0xbd   : > { %4193 = vmatprep.subr.bf16.mxu0 %v4686_v52  ;;  %v4726_v52 = vld [vmem:[%s5260_s7 + $0x470] sm:$0xff]  }
  0xbe   : > { %4214 = vmatpush3.bf16.msra.mxu1 %v4685_v51  ;;  %v4725_v51 = vld [vmem:[%s5260_s7 + $0x4b8] sm:$0xff]  }
  0xbf   : > { %4215 = vmatprep.subr.bf16.mxu1 %v4688_v54  ;;  %v4728_v54 = vld [vmem:[%s5260_s7 + $0x4f0] sm:$0xff]  }
  0xc0   : > { %4194 = vmatpush3.bf16.msra.mxu0 %v4687_v53  ;;  %v4727_v53 = vld [vmem:[%s5260_s7 + $0x430] sm:$0xff]  }
  0xc1   : > { %4223 = vmatprep.subr.bf16.mxu0 %v4690_v62  ;;  %v4736_v62 = vld [vmem:[%s5260_s7 + $0x4e0] sm:$0xff]  }
  0xc2   : > { %4216 = vmatpush3.bf16.msra.mxu1 %v4689_v58  ;;  %v4732_v58 = vld [vmem:[%s5260_s7 + $0x4e8] sm:$0xff]  }
  0xc3   : > { %3011 = vmatmul.mubr.bf16.vlgmr.msra.gmra.mxu0 %v321_v61  ;;  %4245 = vmatprep.subr.bf16.mxu1 %v4692_v6  ;;  %v4735_v61 = vld [vmem:[%s5260_s7 + $0x420] sm:$0xff]   ;;  %v4744_v6 = vld [vmem:[%s5260_s7 + $0x4d0] sm:$0xff]  }
  0xc4   : > { %4224 = vmatpush3.bf16.msra.mxu0 %v4691_v2  ;;  %3092 = vmatprep.mubr.bf16.mxu0 %v326_v37  ;;  %v4740_v2 = vld [vmem:[%s5260_s7 + $0x4d8] sm:$0xff]   ;;  %v4763_v37 = vld [vmem:[%s5260_s7 + $0x528] sm:$0xff]  }
  0xc5   : > { %3052 = vmatmul.mubr.bf16.vlgmr.msra.gmra.mxu1 %v323_v5  ;;  %4225 = vmatprep.subr.bf16.mxu0 %v4694_v8  ;;  %v4743_v5 = vld [vmem:[%s5260_s7 + $0x410] sm:$0xff]   ;;  %v4746_v8 = vld [vmem:[%s5260_s7 + $0x448] sm:$0xff]  }
  0xc6   : > { %4246 = vmatpush3.bf16.msra.mxu1 %v4693_v7  ;;  %3133 = vmatprep.mubr.bf16.mxu1 %v328_v45  ;;  %v4745_v7 = vld [vmem:[%s5260_s7 + $0x490] sm:$0xff]   ;;  %v4771_v45 = vld [vmem:[%s5260_s7 + $0x518] sm:$0xff]  }
  0xc7   : > { %4247 = vmatprep.subr.bf16.mxu1 %v4696_v10  ;;  %v4748_v10 = vld [vmem:[%s5260_s7 + $0x4c8] sm:$0xff]  }
  0xc8   : > { %4226 = vmatpush3.bf16.msra.mxu0 %v4695_v9  ;;  %v4747_v9 = vld [vmem:[%s5260_s7 + $0x408] sm:$0xff]  }
  0xc9   : > { %4227 = vmatprep.subr.bf16.mxu0 %v4698_v12  ;;  %v4750_v12 = vld [vmem:[%s5260_s7 + $0x440] sm:$0xff]  }
  0xca   : > { %4248 = vmatpush3.bf16.msra.mxu1 %v4697_v11  ;;  %v4749_v11 = vld [vmem:[%s5260_s7 + $0x488] sm:$0xff]  }
  0xcb   : > { %4249 = vmatprep.subr.bf16.mxu1 %v4700_v14  ;;  %v4752_v14 = vld [vmem:[%s5260_s7 + $0x4c0] sm:$0xff]  }
  0xcc   : > { %4228 = vmatpush3.bf16.msra.mxu0 %v4699_v13  ;;  %v4751_v13 = vld [vmem:[%s5260_s7 + $0x400] sm:$0xff]  }
  0xcd   : > { %4229 = vmatprep.subr.bf16.mxu0 %v4702_v16  ;;  %v291_v16 = vld [vmem:[#allocation2 + $0x1c0] sm:$0xff] }
  0xce   : > { %4250 = vmatpush3.bf16.msra.mxu1 %v4701_v15  ;;  %v252_v15 = vld [vmem:[#allocation2 + $0x88] sm:$0xff] }
  0xcf   : > { %4251 = vmatprep.subr.bf16.mxu1 %v4704_v18  ;;  %v4753_v18 = vld [vmem:[%s5260_s7 + $0x480] sm:$0xff]  }
  0xd0   : > { %4230 = vmatpush3.bf16.msra.mxu0 %v4703_v17  ;;  %v330_v17 = vpack.c.bf16 %v291_v16, %v252_v15  ;;  %v4793_v15 = vld [vmem:[%s5260_s7 + $0x6b0] sm:$0xff]   ;;  %v4794_v16 = vld [vmem:[%s5260_s7 + $0x668] sm:$0xff]  }
  0xd1   : > { %4231 = vmatprep.subr.bf16.mxu0 %v4706_v20  ;;  %v290_v20 = vld [vmem:[#allocation2 + $0x1b8] sm:$0xff] }
  0xd2   : > { %4252 = vmatpush3.bf16.msra.mxu1 %v4705_v19  ;;  %v251_v19 = vld [vmem:[#allocation2 + $0x80] sm:$0xff] }
  0xd3   : > { %4253 = vmatprep.subr.bf16.mxu1 %v4708_v22  ;;  %v4754_v22 = vld [vmem:[%s5260_s7 + $0x578] sm:$0xff]  }
  0xd4   : > { %4232 = vmatpush3.bf16.msra.mxu0 %v4707_v21  ;;  %v329_v21 = vpack.c.bf16 %v290_v20, %v251_v19  ;;  %v4797_v19 = vld [vmem:[%s5260_s7 + $0x6a8] sm:$0xff]   ;;  %v4798_v20 = vld [vmem:[%s5260_s7 + $0x660] sm:$0xff]  }
  0xd5   : > { %4233 = vmatprep.subr.bf16.mxu0 %v4710_v24  ;;  %v293_v24 = vld [vmem:[#allocation2 + $0x1d0] sm:$0xff] }
  0xd6   : > { %4254 = vmatpush3.bf16.msra.mxu1 %v4709_v23  ;;  %v254_v23 = vld [vmem:[#allocation2 + $0x98] sm:$0xff] }
  0xd7   : > { %4255 = vmatprep.subr.bf16.mxu1 %v4712_v26  ;;  %v4755_v26 = vld [vmem:[%s5260_s7 + $0x538] sm:$0xff]  }
  0xd8   : > { %4234 = vmatpush3.bf16.msra.mxu0 %v4711_v25  ;;  %v332_v25 = vpack.c.bf16 %v293_v24, %v254_v23  ;;  %v4801_v23 = vld [vmem:[%s5260_s7 + $0x6a0] sm:$0xff]   ;;  %v4802_v24 = vld [vmem:[%s5260_s7 + $0x658] sm:$0xff]  }
  0xd9   : > { %4235 = vmatprep.subr.bf16.mxu0 %v4714_v28  ;;  %v292_v28 = vld [vmem:[#allocation2 + $0x1c8] sm:$0xff] }
  0xda   : > { %4256 = vmatpush3.bf16.msra.mxu1 %v4713_v27  ;;  %v253_v27 = vld [vmem:[#allocation2 + $0x90] sm:$0xff] }
  0xdb   : > { %4257 = vmatprep.subr.bf16.mxu1 %v4716_v30  ;;  %v4756_v30 = vld [vmem:[%s5260_s7 + $0x5f8] sm:$0xff]  }
  0xdc   : > { %4236 = vmatpush3.bf16.msra.mxu0 %v4715_v29  ;;  %v331_v29 = vpack.c.bf16 %v292_v28, %v253_v27  ;;  %v4805_v27 = vld [vmem:[%s5260_s7 + $0x698] sm:$0xff]   ;;  %v4806_v28 = vld [vmem:[%s5260_s7 + $0x650] sm:$0xff]  }
  0xdd   : > { %4237 = vmatprep.subr.bf16.mxu0 %v4718_v32  ;;  %v4758_v32 = vld [vmem:[%s5260_s7 + $0x570] sm:$0xff]  }
  0xde   : > { %4258 = vmatpush3.bf16.msra.mxu1 %v4717_v31  ;;  %v4757_v31 = vld [vmem:[%s5260_s7 + $0x5b8] sm:$0xff]  }
  0xdf   : > { %4259 = vmatprep.subr.bf16.mxu1 %v4720_v34  ;;  %v4760_v34 = vld [vmem:[%s5260_s7 + $0x5f0] sm:$0xff]  }
  0xe0   : > { %4238 = vmatpush3.bf16.msra.mxu0 %v4719_v33  ;;  %v4759_v33 = vld [vmem:[%s5260_s7 + $0x530] sm:$0xff]  }
  0xe1   : > { %4267 = vmatprep.subr.bf16.mxu0 %v4722_v42  ;;  %v4768_v42 = vld [vmem:[%s5260_s7 + $0x5e0] sm:$0xff]  }
  0xe2   : > { %4260 = vmatpush3.bf16.msra.mxu1 %v4721_v38  ;;  %v4764_v38 = vld [vmem:[%s5260_s7 + $0x5e8] sm:$0xff]  }
  0xe3   : > { %3093 = vmatmul.mubr.bf16.vlgmr.msra.gmra.mxu0 %v325_v41  ;;  %4289 = vmatprep.subr.bf16.mxu1 %v4724_v50  ;;  %v4767_v41 = vld [vmem:[%s5260_s7 + $0x520] sm:$0xff]   ;;  %v4776_v50 = vld [vmem:[%s5260_s7 + $0x5d0] sm:$0xff]  }
  0xe4   : > { %4268 = vmatpush3.bf16.msra.mxu0 %v4723_v46  ;;  %3174 = vmatprep.mubr.bf16.mxu0 %v330_v17  ;;  %v4772_v46 = vld [vmem:[%s5260_s7 + $0x5d8] sm:$0xff]   ;;  %v4795_v17 = vld [vmem:[%s5260_s7 + $0x628] sm:$0xff]  }
  0xe5   : > { %3134 = vmatmul.mubr.bf16.vlgmr.msra.gmra.mxu1 %v327_v49  ;;  %4269 = vmatprep.subr.bf16.mxu0 %v4726_v52  ;;  %v4775_v49 = vld [vmem:[%s5260_s7 + $0x510] sm:$0xff]   ;;  %v4778_v52 = vld [vmem:[%s5260_s7 + $0x548] sm:$0xff]  }
  0xe6   : > { %4290 = vmatpush3.bf16.msra.mxu1 %v4725_v51  ;;  %3215 = vmatprep.mubr.bf16.mxu1 %v332_v25  ;;  %v4777_v51 = vld [vmem:[%s5260_s7 + $0x590] sm:$0xff]   ;;  %v4803_v25 = vld [vmem:[%s5260_s7 + $0x618] sm:$0xff]  }
  0xe7   : > { %4291 = vmatprep.subr.bf16.mxu1 %v4728_v54  ;;  %v4780_v54 = vld [vmem:[%s5260_s7 + $0x5c8] sm:$0xff]  }
  0xe8   : > { %4270 = vmatpush3.bf16.msra.mxu0 %v4727_v53  ;;  %v4779_v53 = vld [vmem:[%s5260_s7 + $0x508] sm:$0xff]  }
  0xe9   : > { %4271 = vmatprep.subr.bf16.mxu0 %v4730_v56  ;;  %v4782_v56 = vld [vmem:[%s5260_s7 + $0x540] sm:$0xff]  }
  0xea   : > { %4292 = vmatpush3.bf16.msra.mxu1 %v4729_v55  ;;  %v4781_v55 = vld [vmem:[%s5260_s7 + $0x588] sm:$0xff]  }
  0xeb   : > { %4293 = vmatprep.subr.bf16.mxu1 %v4732_v58  ;;  %v4784_v58 = vld [vmem:[%s5260_s7 + $0x5c0] sm:$0xff]  }
  0xec   : > { %4272 = vmatpush3.bf16.msra.mxu0 %v4731_v57  ;;  %v4783_v57 = vld [vmem:[%s5260_s7 + $0x500] sm:$0xff]  }
  0xed   : > { %4273 = vmatprep.subr.bf16.mxu0 %v4734_v60  ;;  %v295_v60 = vld [vmem:[#allocation2 + $0x1e0] sm:$0xff] }
  0xee   : > { %4294 = vmatpush3.bf16.msra.mxu1 %v4733_v59  ;;  %v256_v59 = vld [vmem:[#allocation2 + $0xa8] sm:$0xff] }
  0xef   : > { %4295 = vmatprep.subr.bf16.mxu1 %v4736_v62  ;;  %v4785_v62 = vld [vmem:[%s5260_s7 + $0x580] sm:$0xff]  }
  0xf0   : > { %4274 = vmatpush3.bf16.msra.mxu0 %v4735_v61  ;;  %v334_v61 = vpack.c.bf16 %v295_v60, %v256_v59  ;;  %v4825_v59 = vld [vmem:[%s5260_s7 + $0x7b0] sm:$0xff]   ;;  %v4826_v60 = vld [vmem:[%s5260_s7 + $0x768] sm:$0xff]  }
  0xf1   : > { %4275 = vmatprep.subr.bf16.mxu0 %v4738_v0  ;;  %v294_v0 = vld [vmem:[#allocation2 + $0x1d8] sm:$0xff] }
  0xf2   : > { %4296 = vmatpush3.bf16.msra.mxu1 %v4737_v63  ;;  %v255_v63 = vld [vmem:[#allocation2 + $0xa0] sm:$0xff] }
  0xf3   : > { %4297 = vmatprep.subr.bf16.mxu1 %v4740_v2  ;;  %v4786_v2 = vld [vmem:[%s5260_s7 + $0x678] sm:$0xff]  }
  0xf4   : > { %4276 = vmatpush3.bf16.msra.mxu0 %v4739_v1  ;;  %v333_v1 = vpack.c.bf16 %v294_v0, %v255_v63  ;;  %v4829_v63 = vld [vmem:[%s5260_s7 + $0x7a8] sm:$0xff]   ;;  %v4830_v0 = vld [vmem:[%s5260_s7 + $0x760] sm:$0xff]  }
  0xf5   : > { %4277 = vmatprep.subr.bf16.mxu0 %v4742_v4  ;;  %v297_v4 = vld [vmem:[#allocation2 + $0x1f0] sm:$0xff] }
  0xf6   : > { %4298 = vmatpush3.bf16.msra.mxu1 %v4741_v3  ;;  %v258_v3 = vld [vmem:[#allocation2 + $0xb8] sm:$0xff] }
  0xf7   : > { %4299 = vmatprep.subr.bf16.mxu1 %v4744_v6  ;;  %v4787_v6 = vld [vmem:[%s5260_s7 + $0x638] sm:$0xff]  }
  0xf8   : > { %4278 = vmatpush3.bf16.msra.mxu0 %v4743_v5  ;;  %v336_v5 = vpack.c.bf16 %v297_v4, %v258_v3  ;;  %v4833_v3 = vld [vmem:[%s5260_s7 + $0x7a0] sm:$0xff]   ;;  %v4834_v4 = vld [vmem:[%s5260_s7 + $0x758] sm:$0xff]  }
  0xf9   : > { %4279 = vmatprep.subr.bf16.mxu0 %v4746_v8  ;;  %v296_v8 = vld [vmem:[#allocation2 + $0x1e8] sm:$0xff] }
  0xfa   : > { %4300 = vmatpush3.bf16.msra.mxu1 %v4745_v7  ;;  %v257_v7 = vld [vmem:[#allocation2 + $0xb0] sm:$0xff] }
  0xfb   : > { %4301 = vmatprep.subr.bf16.mxu1 %v4748_v10  ;;  %v4788_v10 = vld [vmem:[%s5260_s7 + $0x6f8] sm:$0xff]  }
  0xfc   : > { %4280 = vmatpush3.bf16.msra.mxu0 %v4747_v9  ;;  %v335_v9 = vpack.c.bf16 %v296_v8, %v257_v7  ;;  %v4837_v7 = vld [vmem:[%s5260_s7 + $0x798] sm:$0xff]   ;;  %v4838_v8 = vld [vmem:[%s5260_s7 + $0x750] sm:$0xff]  }
  0xfd   : > { %4281 = vmatprep.subr.bf16.mxu0 %v4750_v12  ;;  %v4790_v12 = vld [vmem:[%s5260_s7 + $0x670] sm:$0xff]  }
  0xfe   : > { %4302 = vmatpush3.bf16.msra.mxu1 %v4749_v11  ;;  %v4789_v11 = vld [vmem:[%s5260_s7 + $0x6b8] sm:$0xff]  }
  0xff   : > { %4303 = vmatprep.subr.bf16.mxu1 %v4752_v14  ;;  %v4792_v14 = vld [vmem:[%s5260_s7 + $0x6f0] sm:$0xff]  }
 0x100   : > { %4282 = vmatpush3.bf16.msra.mxu0 %v4751_v13  ;;  %v4791_v13 = vld [vmem:[%s5260_s7 + $0x630] sm:$0xff]  }
 0x101   : > { %4311 = vmatprep.subr.bf16.mxu0 %v4754_v22  ;;  %v4800_v22 = vld [vmem:[%s5260_s7 + $0x6e0] sm:$0xff]  }
 0x102   : > { %4304 = vmatpush3.bf16.msra.mxu1 %v4753_v18  ;;  %v4796_v18 = vld [vmem:[%s5260_s7 + $0x6e8] sm:$0xff]  }
 0x103   : > { %3175 = vmatmul.mubr.bf16.vlgmr.msra.gmra.mxu0 %v329_v21  ;;  %4333 = vmatprep.subr.bf16.mxu1 %v4756_v30  ;;  %v4799_v21 = vld [vmem:[%s5260_s7 + $0x620] sm:$0xff]   ;;  %v4808_v30 = vld [vmem:[%s5260_s7 + $0x6d0] sm:$0xff]  }
 0x104   : > { %4312 = vmatpush3.bf16.msra.mxu0 %v4755_v26  ;;  %3256 = vmatprep.mubr.bf16.mxu0 %v334_v61  ;;  %v4804_v26 = vld [vmem:[%s5260_s7 + $0x6d8] sm:$0xff]   ;;  %v4827_v61 = vld [vmem:[%s5260_s7 + $0x728] sm:$0xff]  }
 0x105   : > { %3216 = vmatmul.mubr.bf16.vlgmr.msra.gmra.mxu1 %v331_v29  ;;  %4313 = vmatprep.subr.bf16.mxu0 %v4758_v32  ;;  %v4807_v29 = vld [vmem:[%s5260_s7 + $0x610] sm:$0xff]   ;;  %v4810_v32 = vld [vmem:[%s5260_s7 + $0x648] sm:$0xff]  }
 0x106   : > { %4334 = vmatpush3.bf16.msra.mxu1 %v4757_v31  ;;  %3297 = vmatprep.mubr.bf16.mxu1 %v336_v5  ;;  %v4809_v31 = vld [vmem:[%s5260_s7 + $0x690] sm:$0xff]   ;;  %v4835_v5 = vld [vmem:[%s5260_s7 + $0x718] sm:$0xff]  }
 0x107   : > { %4335 = vmatprep.subr.bf16.mxu1 %v4760_v34  ;;  %v4812_v34 = vld [vmem:[%s5260_s7 + $0x6c8] sm:$0xff]  }
 0x108   : > { %4314 = vmatpush3.bf16.msra.mxu0 %v4759_v33  ;;  %v4811_v33 = vld [vmem:[%s5260_s7 + $0x608] sm:$0xff]  }
 0x109   : > { %4315 = vmatprep.subr.bf16.mxu0 %v4762_v36  ;;  %v4814_v36 = vld [vmem:[%s5260_s7 + $0x640] sm:$0xff]  }
 0x10a   : > { %4336 = vmatpush3.bf16.msra.mxu1 %v4761_v35  ;;  %v4813_v35 = vld [vmem:[%s5260_s7 + $0x688] sm:$0xff]  }
 0x10b   : > { %4337 = vmatprep.subr.bf16.mxu1 %v4764_v38  ;;  %v4816_v38 = vld [vmem:[%s5260_s7 + $0x6c0] sm:$0xff]  }
 0x10c   : > { %4316 = vmatpush3.bf16.msra.mxu0 %v4763_v37  ;;  %v4815_v37 = vld [vmem:[%s5260_s7 + $0x600] sm:$0xff]  }
 0x10d   : > { %4317 = vmatprep.subr.bf16.mxu0 %v4766_v40  ;;  %v299_v40 = vld [vmem:[#allocation2 + $0x200] sm:$0xff] }
 0x10e   : > { %4338 = vmatpush3.bf16.msra.mxu1 %v4765_v39  ;;  %v260_v39 = vld [vmem:[#allocation2 + $0xc8] sm:$0xff] }
 0x10f   : > { %4339 = vmatprep.subr.bf16.mxu1 %v4768_v42  ;;  %v4817_v42 = vld [vmem:[%s5260_s7 + $0x680] sm:$0xff]  }
 0x110   : > { %4318 = vmatpush3.bf16.msra.mxu0 %v4767_v41  ;;  %v338_v41 = vpack.c.bf16 %v299_v40, %v260_v39  ;;  %v4857_v39 = vld [vmem:[%s5260_s7 + $0x8b0] sm:$0xff]   ;;  %v4858_v40 = vld [vmem:[%s5260_s7 + $0x868] sm:$0xff]  }
 0x111   : > { %4319 = vmatprep.subr.bf16.mxu0 %v4770_v44  ;;  %v298_v44 = vld [vmem:[#allocation2 + $0x1f8] sm:$0xff] }
 0x112   : > { %4340 = vmatpush3.bf16.msra.mxu1 %v4769_v43  ;;  %v259_v43 = vld [vmem:[#allocation2 + $0xc0] sm:$0xff] }
 0x113   : > { %4341 = vmatprep.subr.bf16.mxu1 %v4772_v46  ;;  %v4818_v46 = vld [vmem:[%s5260_s7 + $0x778] sm:$0xff]  }
 0x114   : > { %4320 = vmatpush3.bf16.msra.mxu0 %v4771_v45  ;;  %v337_v45 = vpack.c.bf16 %v298_v44, %v259_v43  ;;  %v4861_v43 = vld [vmem:[%s5260_s7 + $0x8a8] sm:$0xff]   ;;  %v4862_v44 = vld [vmem:[%s5260_s7 + $0x860] sm:$0xff]  }
 0x115   : > { %4321 = vmatprep.subr.bf16.mxu0 %v4774_v48  ;;  %v301_v48 = vld [vmem:[#allocation2 + $0x210] sm:$0xff] }
 0x116   : > { %4342 = vmatpush3.bf16.msra.mxu1 %v4773_v47  ;;  %v262_v47 = vld [vmem:[#allocation2 + $0xd8] sm:$0xff] }
 0x117   : > { %4343 = vmatprep.subr.bf16.mxu1 %v4776_v50  ;;  %v4819_v50 = vld [vmem:[%s5260_s7 + $0x738] sm:$0xff]  }
 0x118   : > { %4322 = vmatpush3.bf16.msra.mxu0 %v4775_v49  ;;  %v340_v49 = vpack.c.bf16 %v301_v48, %v262_v47  ;;  %v4865_v47 = vld [vmem:[%s5260_s7 + $0x8a0] sm:$0xff]   ;;  %v4866_v48 = vld [vmem:[%s5260_s7 + $0x858] sm:$0xff]  }
 0x119   : > { %4323 = vmatprep.subr.bf16.mxu0 %v4778_v52  ;;  %v300_v52 = vld [vmem:[#allocation2 + $0x208] sm:$0xff] }
 0x11a   : > { %4344 = vmatpush3.bf16.msra.mxu1 %v4777_v51  ;;  %v261_v51 = vld [vmem:[#allocation2 + $0xd0] sm:$0xff] }
 0x11b   : > { %4345 = vmatprep.subr.bf16.mxu1 %v4780_v54  ;;  %v4820_v54 = vld [vmem:[%s5260_s7 + $0x7f8] sm:$0xff]  }
 0x11c   : > { %4324 = vmatpush3.bf16.msra.mxu0 %v4779_v53  ;;  %v339_v53 = vpack.c.bf16 %v300_v52, %v261_v51  ;;  %v4869_v51 = vld [vmem:[%s5260_s7 + $0x898] sm:$0xff]   ;;  %v4870_v52 = vld [vmem:[%s5260_s7 + $0x850] sm:$0xff]  }
 0x11d   : > { %4325 = vmatprep.subr.bf16.mxu0 %v4782_v56  ;;  %v4822_v56 = vld [vmem:[%s5260_s7 + $0x770] sm:$0xff]  }
 0x11e   : > { %4346 = vmatpush3.bf16.msra.mxu1 %v4781_v55  ;;  %v4821_v55 = vld [vmem:[%s5260_s7 + $0x7b8] sm:$0xff]  }
 0x11f   : > { %4347 = vmatprep.subr.bf16.mxu1 %v4784_v58  ;;  %v4824_v58 = vld [vmem:[%s5260_s7 + $0x7f0] sm:$0xff]  }
 0x120   : > { %4326 = vmatpush3.bf16.msra.mxu0 %v4783_v57  ;;  %v4823_v57 = vld [vmem:[%s5260_s7 + $0x730] sm:$0xff]  }
 0x121   : > { %4355 = vmatprep.subr.bf16.mxu0 %v4786_v2  ;;  %v4832_v2 = vld [vmem:[%s5260_s7 + $0x7e0] sm:$0xff]  }
 0x122   : > { %4348 = vmatpush3.bf16.msra.mxu1 %v4785_v62  ;;  %v4828_v62 = vld [vmem:[%s5260_s7 + $0x7e8] sm:$0xff]  }
 0x123   : > { %3257 = vmatmul.mubr.bf16.vlgmr.msra.gmra.mxu0 %v333_v1  ;;  %4377 = vmatprep.subr.bf16.mxu1 %v4788_v10  ;;  %v4831_v1 = vld [vmem:[%s5260_s7 + $0x720] sm:$0xff]   ;;  %v4840_v10 = vld [vmem:[%s5260_s7 + $0x7d0] sm:$0xff]  }
 0x124   : > { %4356 = vmatpush3.bf16.msra.mxu0 %v4787_v6  ;;  %3338 = vmatprep.mubr.bf16.mxu0 %v338_v41  ;;  %v4836_v6 = vld [vmem:[%s5260_s7 + $0x7d8] sm:$0xff]   ;;  %v4859_v41 = vld [vmem:[%s5260_s7 + $0x828] sm:$0xff]  }
 0x125   : > { %3298 = vmatmul.mubr.bf16.vlgmr.msra.gmra.mxu1 %v335_v9  ;;  %4357 = vmatprep.subr.bf16.mxu0 %v4790_v12  ;;  %v4839_v9 = vld [vmem:[%s5260_s7 + $0x710] sm:$0xff]   ;;  %v4842_v12 = vld [vmem:[%s5260_s7 + $0x748] sm:$0xff]  }
 0x126   : > { %4378 = vmatpush3.bf16.msra.mxu1 %v4789_v11  ;;  %3379 = vmatprep.mubr.bf16.mxu1 %v340_v49  ;;  %v4841_v11 = vld [vmem:[%s5260_s7 + $0x790] sm:$0xff]   ;;  %v4867_v49 = vld [vmem:[%s5260_s7 + $0x818] sm:$0xff]  }
 0x127   : > { %4379 = vmatprep.subr.bf16.mxu1 %v4792_v14  ;;  %v4844_v14 = vld [vmem:[%s5260_s7 + $0x7c8] sm:$0xff]  }
 0x128   : > { %4358 = vmatpush3.bf16.msra.mxu0 %v4791_v13  ;;  %v4843_v13 = vld [vmem:[%s5260_s7 + $0x708] sm:$0xff]  }
 0x129   : > { %4359 = vmatprep.subr.bf16.mxu0 %v4794_v16  ;;  %v4846_v16 = vld [vmem:[%s5260_s7 + $0x740] sm:$0xff]  }
 0x12a   : > { %4380 = vmatpush3.bf16.msra.mxu1 %v4793_v15  ;;  %v4845_v15 = vld [vmem:[%s5260_s7 + $0x788] sm:$0xff]  }
 0x12b   : > { %4381 = vmatprep.subr.bf16.mxu1 %v4796_v18  ;;  %v4848_v18 = vld [vmem:[%s5260_s7 + $0x7c0] sm:$0xff]  }
 0x12c   : > { %4360 = vmatpush3.bf16.msra.mxu0 %v4795_v17  ;;  %v4847_v17 = vld [vmem:[%s5260_s7 + $0x700] sm:$0xff]  }
 0x12d   : > { %4361 = vmatprep.subr.bf16.mxu0 %v4798_v20  ;;  %v303_v20 = vld [vmem:[#allocation2 + $0x220] sm:$0xff] }
 0x12e   : > { %4382 = vmatpush3.bf16.msra.mxu1 %v4797_v19  ;;  %v264_v19 = vld [vmem:[#allocation2 + $0xe8] sm:$0xff] }
 0x12f   : > { %4383 = vmatprep.subr.bf16.mxu1 %v4800_v22  ;;  %v4849_v22 = vld [vmem:[%s5260_s7 + $0x780] sm:$0xff]  }
 0x130   : > { %4362 = vmatpush3.bf16.msra.mxu0 %v4799_v21  ;;  %v342_v21 = vpack.c.bf16 %v303_v20, %v264_v19  ;;  %v4888_v19 = vld [vmem:[%s5260_s7 + $0x960] sm:$0xff]  }
 0x131   : > { %4363 = vmatprep.subr.bf16.mxu0 %v4802_v24  ;;  %v302_v24 = vld [vmem:[#allocation2 + $0x218] sm:$0xff]  ;;  %v4889_v20 = vld [vmem:[%s5260_s7 + $0x920] sm:$0xff]  }
 0x132   : > { %4384 = vmatpush3.bf16.msra.mxu1 %v4801_v23  ;;  %v263_v23 = vld [vmem:[#allocation2 + $0xe0] sm:$0xff] }
 0x133   : > { %4385 = vmatprep.subr.bf16.mxu1 %v4804_v26  ;;  %v4850_v26 = vld [vmem:[%s5260_s7 + $0x878] sm:$0xff]  }
 0x134   : > { %4364 = vmatpush3.bf16.msra.mxu0 %v4803_v25  ;;  %v341_v25 = vpack.c.bf16 %v302_v24, %v263_v23  ;;  %v4896_v23 = vld [vmem:[%s5260_s7 + $0x988] sm:$0x7f]   ;;  %v4892_v24 = vld [vmem:[%s5260_s7 + $0x950] sm:$0xff]  }
 0x135   : > { %4365 = vmatprep.subr.bf16.mxu0 %v4806_v28  ;;  %v305_v28 = vld [vmem:[#allocation2 + $0x230] sm:$0xff] }
 0x136   : > { %4386 = vmatpush3.bf16.msra.mxu1 %v4805_v27  ;;  %v266_v27 = vld [vmem:[#allocation2 + $0xf8] sm:$0xff] }
 0x137   : > { %4387 = vmatprep.subr.bf16.mxu1 %v4808_v30  ;;  %v4851_v30 = vld [vmem:[%s5260_s7 + $0x838] sm:$0xff]  }
 0x138   : > { %4366 = vmatpush3.bf16.msra.mxu0 %v4807_v29  ;;  %v344_v29 = vpack.c.bf16 %v305_v28, %v266_v27  ;;  %v272_v27 = vld [vmem:[#allocation2 + $0x128] sm:$0xff]  ;;  %v311_v28 = vld [vmem:[#allocation2 + $0x260] sm:$0xff] }
 0x139   : > { %4367 = vmatprep.subr.bf16.mxu0 %v4810_v32  ;;  %v304_v32 = vld [vmem:[#allocation2 + $0x228] sm:$0xff] }
 0x13a   : > { %4388 = vmatpush3.bf16.msra.mxu1 %v4809_v31  ;;  %v265_v31 = vld [vmem:[#allocation2 + $0xf0] sm:$0xff] }
 0x13b   : > { %4389 = vmatprep.subr.bf16.mxu1 %v4812_v34  ;;  %v4852_v34 = vld [vmem:[%s5260_s7 + $0x8f8] sm:$0xff]  }
 0x13c   : > { %4368 = vmatpush3.bf16.msra.mxu0 %v4811_v33  ;;  %v343_v33 = vpack.c.bf16 %v304_v32, %v265_v31  ;;  %v273_v31 = vld [vmem:[#allocation2 + $0x130] sm:$0xff]  ;;  %v4894_v32 = vld [vmem:[%s5260_s7 + $0x948] sm:$0xff]  }
 0x13d   : > { %4369 = vmatprep.subr.bf16.mxu0 %v4814_v36  ;;  %v4854_v36 = vld [vmem:[%s5260_s7 + $0x870] sm:$0xff]  }
 0x13e   : > { %4390 = vmatpush3.bf16.msra.mxu1 %v4813_v35  ;;  %v4853_v35 = vld [vmem:[%s5260_s7 + $0x8b8] sm:$0xff]  }
 0x13f   : > { %4391 = vmatprep.subr.bf16.mxu1 %v4816_v38  ;;  %v4856_v38 = vld [vmem:[%s5260_s7 + $0x8f0] sm:$0xff]  }
 0x140   : > { %4370 = vmatpush3.bf16.msra.mxu0 %v4815_v37  ;;  %v4855_v37 = vld [vmem:[%s5260_s7 + $0x830] sm:$0xff]  }
 0x141   : > { %4399 = vmatprep.subr.bf16.mxu0 %v4818_v46  ;;  %v4864_v46 = vld [vmem:[%s5260_s7 + $0x8e0] sm:$0xff]  }
 0x142   : > { %4392 = vmatpush3.bf16.msra.mxu1 %v4817_v42  ;;  %v4860_v42 = vld [vmem:[%s5260_s7 + $0x8e8] sm:$0xff]  }
 0x143   : > { %3339 = vmatmul.mubr.bf16.vlgmr.msra.gmra.mxu0 %v337_v45  ;;  %4421 = vmatprep.subr.bf16.mxu1 %v4820_v54  ;;  %v4863_v45 = vld [vmem:[%s5260_s7 + $0x820] sm:$0xff]   ;;  %v4872_v54 = vld [vmem:[%s5260_s7 + $0x8d0] sm:$0xff]  }
 0x144   : > { %4400 = vmatpush3.bf16.msra.mxu0 %v4819_v50  ;;  %3420 = vmatprep.mubr.bf16.mxu0 %v342_v21  ;;  %v4868_v50 = vld [vmem:[%s5260_s7 + $0x8d8] sm:$0xff]  }
 0x145   : > { %3380 = vmatmul.mubr.bf16.vlgmr.msra.gmra.mxu1 %v339_v53  ;;  %4401 = vmatprep.subr.bf16.mxu0 %v4822_v56  ;;  %v4871_v53 = vld [vmem:[%s5260_s7 + $0x810] sm:$0xff]   ;;  %v4874_v56 = vld [vmem:[%s5260_s7 + $0x848] sm:$0xff]   ;;  %v4890_v21 = vld [vmem:[%s5260_s7 + $0x958] sm:$0xff]  }
 0x146   : > { %4422 = vmatpush3.bf16.msra.mxu1 %v4821_v55  ;;  %3461 = vmatprep.mubr.bf16.mxu1 %v344_v29  ;;  %v4873_v55 = vld [vmem:[%s5260_s7 + $0x890] sm:$0xff]  }
 0x147   : > { %4423 = vmatprep.subr.bf16.mxu1 %v4824_v58  ;;  %v4876_v58 = vld [vmem:[%s5260_s7 + $0x8c8] sm:$0xff]   ;;  %v4893_v29 = vld [vmem:[%s5260_s7 + $0x910] sm:$0xff]  }
 0x148   : > { %4402 = vmatpush3.bf16.msra.mxu0 %v4823_v57  ;;  %v4875_v57 = vld [vmem:[%s5260_s7 + $0x808] sm:$0xff]  }
 0x149   : > { %4403 = vmatprep.subr.bf16.mxu0 %v4826_v60  ;;  %v4878_v60 = vld [vmem:[%s5260_s7 + $0x840] sm:$0xff]  }
 0x14a   : > { %4424 = vmatpush3.bf16.msra.mxu1 %v4825_v59  ;;  %v4877_v59 = vld [vmem:[%s5260_s7 + $0x888] sm:$0xff]  }
 0x14b   : > { %4425 = vmatprep.subr.bf16.mxu1 %v4828_v62  ;;  %v4880_v62 = vld [vmem:[%s5260_s7 + $0x8c0] sm:$0xff]  }
 0x14c   : > { %4404 = vmatpush3.bf16.msra.mxu0 %v4827_v61  ;;  %v4879_v61 = vld [vmem:[%s5260_s7 + $0x800] sm:$0xff]  }
 0x14d   : > { %4405 = vmatprep.subr.bf16.mxu0 %v4830_v0  ;;  %v307_v0 = vld [vmem:[#allocation2 + $0x240] sm:$0xff] }
 0x14e   : > { %4426 = vmatpush3.bf16.msra.mxu1 %v4829_v63  ;;  %v268_v63 = vld [vmem:[#allocation2 + $0x108] sm:$0xff] }
 0x14f   : > { %4427 = vmatprep.subr.bf16.mxu1 %v4832_v2  ;;  %v4881_v2 = vld [vmem:[%s5260_s7 + $0x880] sm:$0xff]  }
 0x150   : > { %4406 = vmatpush3.bf16.msra.mxu0 %v4831_v1  ;;  %v346_v1 = vpack.c.bf16 %v307_v0, %v268_v63 }
 0x151   : > { %4407 = vmatprep.subr.bf16.mxu0 %v4834_v4  ;;  %v306_v4 = vld [vmem:[#allocation2 + $0x238] sm:$0xff] }
 0x152   : > { %4428 = vmatpush3.bf16.msra.mxu1 %v4833_v3  ;;  %v267_v3 = vld [vmem:[#allocation2 + $0x100] sm:$0xff] }
 0x153   : > { %4429 = vmatprep.subr.bf16.mxu1 %v4836_v6  ;;  %v4882_v6 = vld [vmem:[%s5260_s7 + $0x978] sm:$0xff]  }
 0x154   : > { %4408 = vmatpush3.bf16.msra.mxu0 %v4835_v5  ;;  %v345_v5 = vpack.c.bf16 %v306_v4, %v267_v3 }
 0x155   : > { %4409 = vmatprep.subr.bf16.mxu0 %v4838_v8  ;;  %v309_v8 = vld [vmem:[#allocation2 + $0x250] sm:$0xff] }
 0x156   : > { %4430 = vmatpush3.bf16.msra.mxu1 %v4837_v7  ;;  %v270_v7 = vld [vmem:[#allocation2 + $0x118] sm:$0xff] }
 0x157   : > { %4431 = vmatprep.subr.bf16.mxu1 %v4840_v10  ;;  %v4883_v10 = vld [vmem:[%s5260_s7 + $0x938] sm:$0xff]  }
 0x158   : > { %4410 = vmatpush3.bf16.msra.mxu0 %v4839_v9  ;;  %v348_v9 = vpack.c.bf16 %v309_v8, %v270_v7 }
 0x159   : > { %4411 = vmatprep.subr.bf16.mxu0 %v4842_v12  ;;  %v308_v12 = vld [vmem:[#allocation2 + $0x248] sm:$0xff] }
 0x15a   : > { %4432 = vmatpush3.bf16.msra.mxu1 %v4841_v11  ;;  %v269_v11 = vld [vmem:[#allocation2 + $0x110] sm:$0xff] }
 0x15b   : > { %4433 = vmatprep.subr.bf16.mxu1 %v4844_v14  ;;  %v347_v14 = vpack.c.bf16 %v308_v12, %v269_v11 }
 0x15c   : > { %4412 = vmatpush3.bf16.msra.mxu0 %v4843_v13  ;;  %v5064_v13 = vmov 0.0  }
 0x15d   : > { %4413 = vmatprep.subr.bf16.mxu0 %v4846_v16  ;;  %v4885_v16 = vld [vmem:[%s5260_s7 + $0x930] sm:$0xff]  }
 0x15e   : > { %4434 = vmatpush3.bf16.msra.mxu1 %v4845_v15  ;;  %v4884_v15 = vld [vmem:[%s5260_s7 + $0x970] sm:$0xff]  }
 0x15f   : > { %4435 = vmatprep.subr.bf16.mxu1 %v4848_v18  ;;  %v4887_v18 = vld [vmem:[%s5260_s7 + $0x928] sm:$0xff]  }
 0x160   : > { %4414 = vmatpush3.bf16.msra.mxu0 %v4847_v17  ;;  %v4886_v17 = vld [vmem:[%s5260_s7 + $0x968] sm:$0xff]  }
 0x161   : > { %4443 = vmatprep.subr.bf16.mxu0 %v4850_v26  ;;  %v4899_v26 = vld [vmem:[%s5260_s7 + $0x980] sm:$0xff]  }
 0x162   : > { %4436 = vmatpush3.bf16.msra.mxu1 %v4849_v22  ;;  %v4891_v22 = vld [vmem:[%s5260_s7 + $0x918] sm:$0xff]  }
 0x163   : > { %3421 = vmatmul.mubr.bf16.vlgmr.msra.gmra.mxu0 %v341_v25  ;;  %4465 = vmatprep.subr.bf16.mxu1 %v4852_v34  ;;  %v2812_v25 = vsel %vm2810_vm1, %v4896_v23, 0 }
 0x164   : > { %4444 = vmatpush3.bf16.msra.mxu0 %v4851_v30  ;;  %3502 = vmatprep.mubr.bf16.mxu0 %v346_v1  ;;  %v350_v30 = vpack.c.bf16 %v311_v28, %v272_v27 }
 0x165   : > { %3462 = vmatmul.mubr.bf16.vlgmr.msra.gmra.mxu1 %v343_v33  ;;  %4445 = vmatprep.subr.bf16.mxu0 %v4854_v36  ;;  %v312_v33 = vld [vmem:[#allocation2 + $0x268] sm:$0xff]  ;;  %v4897_v36 = vld [vmem:[%s5260_s7 + $0x940] sm:$0xff]  }
 0x166   : > { %4466 = vmatpush3.bf16.msra.mxu1 %v4853_v35  ;;  %3543 = vmatprep.mubr.bf16.mxu1 %v348_v9  ;;  %v351_v34 = vpack.c.bf16 %v312_v33, %v273_v31  ;;  %v4895_v35 = vld [vmem:[%s5260_s7 + $0x908] sm:$0xff]  }
 0x167   : > { %4467 = vmatprep.subr.bf16.mxu1 %v4856_v38  ;;  %v271_v38 = vld [vmem:[#allocation2 + $0x120] sm:$0xff] }
 0x168   : > { %4446 = vmatpush3.bf16.msra.mxu0 %v4855_v37  ;;  %v4898_v37 = vld [vmem:[%s5260_s7 + $0x900] sm:$0xff]  }
 0x169   : > { %4447 = vmatprep.subr.bf16.mxu0 %v4858_v40 }
 0x16a   : > { %4468 = vmatpush3.bf16.msra.mxu1 %v4857_v39  ;;  %v310_v39 = vld [vmem:[#allocation2 + $0x258] sm:$0xff] }
 0x16b   : > { %4469 = vmatprep.subr.bf16.mxu1 %v4860_v42  ;;  %v349_v40 = vpack.c.bf16 %v310_v39, %v271_v38 }
 0x16c   : > { %4448 = vmatpush3.bf16.msra.mxu0 %v4859_v41  ;;  %v4129_v41 = vpop.f32.mrf.mxu1 }
 0x16d   : > { %4449 = vmatprep.subr.bf16.mxu0 %v4862_v44 }
 0x16e   : > { %4470 = vmatpush3.bf16.msra.mxu1 %v4861_v43  ;;  %v4130_v42 = vpop.f32.mrf.mxu1  ;;  %v4107_v43 = vpop.f32.mrf.mxu0 }
 0x16f   : > { %4471 = vmatprep.subr.bf16.mxu1 %v4864_v46  ;;  %v4131_v28 = vadd.f32 %v4130_v42, %v4129_v41 }
 0x170   : > { %4450 = vmatpush3.bf16.msra.mxu0 %v4863_v45  ;;  %v4132_v44 = vpop.f32.mrf.mxu1  ;;  %v4108_v45 = vpop.f32.mrf.mxu0 }
 0x171   : > { %4451 = vmatprep.subr.bf16.mxu0 %v4866_v48 }
 0x172   : > { %4472 = vmatpush3.bf16.msra.mxu1 %v4865_v47  ;;  %v4133_v46 = vpop.f32.mrf.mxu1  ;;  %v4110_v48 = vpop.f32.mrf.mxu0 }
 0x173   : > { %4473 = vmatprep.subr.bf16.mxu1 %v4868_v50 }
 0x174   : > { %4452 = vmatpush3.bf16.msra.mxu0 %v4867_v49  ;;  %v4173_v47 = vpop.f32.mrf.mxu1  ;;  %v4111_v50 = vpop.f32.mrf.mxu0 }
 0x175   : > { %4453 = vmatprep.subr.bf16.mxu0 %v4870_v52 }
 0x176   : > { %4474 = vmatpush3.bf16.msra.mxu1 %v4869_v51  ;;  %v4174_v49 = vpop.f32.mrf.mxu1  ;;  %v4151_v51 = vpop.f32.mrf.mxu0 }
 0x177   : > { %4475 = vmatprep.subr.bf16.mxu1 %v4872_v54  ;;  %v4175_v38 = vadd.f32 %v4174_v49, %v4173_v47 }
 0x178   : > { %4454 = vmatpush3.bf16.msra.mxu0 %v4871_v53  ;;  %v4176_v52 = vpop.f32.mrf.mxu1  ;;  %v4152_v53 = vpop.f32.mrf.mxu0 }
 0x179   : > { %4455 = vmatprep.subr.bf16.mxu0 %v4874_v56 }
 0x17a   : > { %4476 = vmatpush3.bf16.msra.mxu1 %v4873_v55  ;;  %v4177_v54 = vpop.f32.mrf.mxu1  ;;  %v4154_v56 = vpop.f32.mrf.mxu0 }
 0x17b   : > { %4477 = vmatprep.subr.bf16.mxu1 %v4876_v58  ;;  %v4178_v41 = vadd.f32 %v4177_v54, %v4176_v52 }
 0x17c   : > { %4456 = vmatpush3.bf16.msra.mxu0 %v4875_v57  ;;  %v4155_v58 = vpop.f32.mrf.mxu0 }
 0x17d   : > { %4457 = vmatprep.subr.bf16.mxu0 %v4878_v60  ;;  %v4156_v39 = vadd.f32 %v4155_v58, %v4154_v56 }
 0x17e   : > { %4478 = vmatpush3.bf16.msra.mxu1 %v4877_v59 }
 0x17f   : > { %4479 = vmatprep.subr.bf16.mxu1 %v4880_v62 }
 0x180   : > { %4458 = vmatpush3.bf16.msra.mxu0 %v4879_v61 }
 0x181   : > { %4487 = vmatprep.subr.bf16.mxu0 %v4882_v6 }
 0x182   : > { %4480 = vmatpush3.bf16.msra.mxu1 %v4881_v2 }
 0x183   : > { %3503 = vmatmul.mubr.bf16.vlgmr.msra.gmra.mxu0 %v345_v5  ;;  %4512 = vmatprep.subr.bf16.mxu1 %v5064_v13  ;;  %v4195_v59 = vpop.f32.mrf.mxu0 }
 0x184   : > { %4488 = vmatpush3.bf16.msra.mxu0 %v4883_v10  ;;  %3584 = vmatprep.mubr.bf16.mxu0 %v350_v30  ;;  %v4153_v30 = vadd.f32 %v4152_v53, %v4151_v51 }
 0x185   : > { %3544 = vmatmul.mubr.bf16.vlgmr.msra.gmra.mxu1 %v347_v14  ;;  %4489 = vmatprep.subr.bf16.mxu0 %v4884_v15  ;;  %v4217_v55 = vpop.f32.mrf.mxu1  ;;  %v4196_v61 = vpop.f32.mrf.mxu0 }
 0x186   : > { %4516 = vmatprep.mubr.msk.bf16.mxu1 %vm5065_vm0, %v5064_v13  ;;  %4513 = vmatpush3.bf16.msra.mxu1 %v2812_v25 }
 0x187   : > { %4514 = vmatprep.subr.bf16.mxu1 %v5064_v13  ;;  %v4218_v57 = vpop.f32.mrf.mxu1  ;;  %v4198_v0 = vpop.f32.mrf.mxu0 }
 0x188   : > { %4490 = vmatpush3.bf16.msra.mxu0 %v4885_v16 }
 0x189   : > { %4491 = vmatprep.subr.bf16.mxu0 %v4886_v17  ;;  %v4220_v60 = vpop.f32.mrf.mxu1  ;;  %v4199_v2 = vpop.f32.mrf.mxu0 }
 0x18a   : > { %4515 = vmatpush3.bf16.msra.mxu1 %v4899_v26  ;;  %v4200_v51 = vadd.f32 %v4199_v2, %v4198_v0 }
 0x18b   : > { %v4221_v62 = vpop.f32.mrf.mxu1 }
 0x18c   : > { %4492 = vmatpush3.bf16.msra.mxu0 %v4887_v18  ;;  %v4222_v47 = vadd.f32 %v4221_v62, %v4220_v60 }
 0x18d   : > { %4493 = vmatprep.subr.bf16.mxu0 %v4888_v19  ;;  %4517 = vmatmul.mubr.msk.bf16.vlgmr.msra.gmra.mxu1 %vm2806_vm2, %v351_v34 }
 0x190   : > { %4494 = vmatpush3.bf16.msra.mxu0 %v4889_v20 }
 0x191   : > { %4495 = vmatprep.subr.bf16.mxu0 %v4890_v21 }
 0x194   : > { %4496 = vmatpush3.bf16.msra.mxu0 %v4891_v22  ;;  %v4109_v22 = vadd.f32 %v4108_v45, %v4107_v43  ;;  %v4197_v45 = vadd.f32 %v4196_v61, %v4195_v59 }
 0x195   : > { %4497 = vmatprep.subr.bf16.mxu0 %v4892_v24  ;;  %v3770_v24 = vld [vmem:[%s207_s30] ss:$0 sm:$0xff] }
 0x196   : > { %v2849_v27 = vadd.f32 %v4109_v22, %v3770_v24 }
 0x198   : > { %4498 = vmatpush3.bf16.msra.mxu0 %v4893_v29  ;;  %v4112_v29 = vadd.f32 %v4111_v50, %v4110_v48  ;;  %v2890_v33 = vadd.f32 %v4131_v28, %v2849_v27  ;;  %v4219_v50 = vadd.f32 %v4218_v57, %v4217_v55 }
 0x199   : > { %4499 = vmatprep.subr.bf16.mxu0 %v4894_v32 }
 0x19a   : > { %v2852_v34 = vadd.f32 %v4112_v29, %v3770_v24 }
 0x19c   : > { %4500 = vmatpush3.bf16.msra.mxu0 %v4895_v35  ;;  %v4134_v35 = vadd.f32 %v4133_v46, %v4132_v44 }
 0x19d   : > { %4501 = vmatprep.subr.bf16.mxu0 %v4897_v36 }
 0x19e   : > { %v2893_v43 = vadd.f32 %v4134_v35, %v2852_v34 }
 0x1a0   : > { %4502 = vmatpush3.bf16.msra.mxu0 %v4898_v37  ;;  %v2931_v37 = vadd.f32 %v4153_v30, %v2890_v33  ;;  %v2934_v22 = vadd.f32 %v4156_v39, %v2893_v43 }
 0x1a2   : > { %v2975_v24 = vadd.f32 %v4178_v41, %v2934_v22 }
 0x1a3   : > { %3585 = vmatmul.mubr.bf16.vlgmr.msra.gmra.mxu0 %v349_v40  ;;  %v4239_v3 = vpop.f32.mrf.mxu0 }
 0x1a4   : > { %v3016_v28 = vadd.f32 %v4200_v51, %v2975_v24 }
 0x1a5   : > { %v5572_v63 = vpop.f32.mrf.mxu1  ;;  %v4240_v5 = vpop.f32.mrf.mxu0 }
 0x1a6   : > { %v4241_v44 = vadd.f32 %v4240_v5, %v4239_v3  ;;  %v3057_v30 = vadd.f32 %v4222_v47, %v3016_v28 }
 0x1a7   : > { %v4262_v1 = vpop.f32.mrf.mxu1  ;;  %v4242_v8 = vpop.f32.mrf.mxu0 }
 0x1a8   : > { %v4263_v59 = vadd.f32 %v4262_v1, %v5572_v63 }
 0x1a9   : > { %v5574_v4 = vpop.f32.mrf.mxu1  ;;  %v4243_v10 = vpop.f32.mrf.mxu0 }
 0x1aa   : > { %v4244_v61 = vadd.f32 %v4243_v10, %v4242_v8 }
 0x1ab   : > { %v5576_v6 = vpop.f32.mrf.mxu1 }
 0x1ac   : > { %v3098_v55 = vadd.f32 %v4244_v61, %v3057_v30  ;;  %v4266_v57 = vadd.f32 %v5576_v6, %v5574_v4 }
 0x1ae   : > { %v3139_v5 = vadd.f32 %v4266_v57, %v3098_v55 }
 0x1c3   : > { %v4283_v11 = vpop.f32.mrf.mxu0 }
 0x1c5   : > { %v5578_v7 = vpop.f32.mrf.mxu1  ;;  %v4284_v13 = vpop.f32.mrf.mxu0 }
 0x1c6   : > { %v4285_v52 = vadd.f32 %v4284_v13, %v4283_v11 }
 0x1c7   : > { %v5580_v9 = vpop.f32.mrf.mxu1  ;;  %v4286_v16 = vpop.f32.mrf.mxu0 }
 0x1c8   : > { %v4307_v60 = vadd.f32 %v5580_v9, %v5578_v7 }
 0x1c9   : > { %v5582_v12 = vpop.f32.mrf.mxu1  ;;  %v4287_v18 = vpop.f32.mrf.mxu0 }
 0x1ca   : > { %v4288_v62 = vadd.f32 %v4287_v18, %v4286_v16 }
 0x1cb   : > { %v5584_v14 = vpop.f32.mrf.mxu1 }
 0x1cc   : > { %v3180_v10 = vadd.f32 %v4288_v62, %v3139_v5  ;;  %v4310_v11 = vadd.f32 %v5584_v14, %v5582_v12 }
 0x1e3   : > { %v4327_v19 = vpop.f32.mrf.mxu0 }
 0x1e5   : > { %v5586_v15 = vpop.f32.mrf.mxu1  ;;  %v4328_v21 = vpop.f32.mrf.mxu0 }
 0x1e6   : > { %v4329_v33 = vadd.f32 %v4328_v21, %v4327_v19 }
 0x1e7   : > { %v5588_v17 = vpop.f32.mrf.mxu1  ;;  %v4330_v26 = vpop.f32.mrf.mxu0 }
 0x1e8   : > { %v4351_v4 = vadd.f32 %v5588_v17, %v5586_v15 }
 0x1e9   : > { %v5590_v20 = vpop.f32.mrf.mxu1  ;;  %v4331_v32 = vpop.f32.mrf.mxu0 }
 0x1ea   : > { %v4332_v6 = vadd.f32 %v4331_v32, %v4330_v26 }
 0x1eb   : > { %v5592_v23 = vpop.f32.mrf.mxu1 }
 0x1ec   : > { %5684 = vst [vmem:[#allocation12_spill] sm:$0xff] %v5592_v23  ;;  %v2972_v23 = vadd.f32 %v4175_v38, %v2931_v37  ;;  %v3221_v37 = vadd.f32 %v4310_v11, %v3180_v10 }
 0x1ee   : > { %v3013_v48 = vadd.f32 %v4197_v45, %v2972_v23  ;;  %v3262_v18 = vadd.f32 %v4332_v6, %v3221_v37 }
 0x1f0   : > { %v3054_v46 = vadd.f32 %v4219_v50, %v3013_v48 }
 0x1f2   : > { %v3095_v58 = vadd.f32 %v4241_v44, %v3054_v46 }
 0x1f3   : > { %v5686_v19 = vld [vmem:[#allocation12_spill] sm:$0xff] }
 0x1f4   : > { %v3136_v23 = vadd.f32 %v4263_v59, %v3095_v58  ;;  %v4354_v21 = vadd.f32 %v5686_v19, %v5590_v20 }
 0x1f6   : > { %v3177_v2 = vadd.f32 %v4285_v52, %v3136_v23  ;;  %v3303_v22 = vadd.f32 %v4354_v21, %v3262_v18 }
 0x1f8   : > { %v3218_v8 = vadd.f32 %v4307_v60, %v3177_v2 }
 0x1fa   : > { %v3259_v13 = vadd.f32 %v4329_v33, %v3218_v8 }
 0x1fc   : > { %v3300_v16 = vadd.f32 %v4351_v4, %v3259_v13 }
 0x203   : > { %v4371_v36 = vpop.f32.mrf.mxu0 }
 0x205   : > { %v5595_v25 = vpop.f32.mrf.mxu1 }
 0x206   : > { %5685 = vst [vmem:[#allocation13_spill] sm:$0xff] %v5595_v25  ;;  %v4372_v25 = vpop.f32.mrf.mxu0 }
 0x207   : > { %v5597_v31 = vpop.f32.mrf.mxu1  ;;  %v4373_v7 = vadd.f32 %v4372_v25, %v4371_v36 }
 0x208   : > { %v4374_v27 = vpop.f32.mrf.mxu0 }
 0x209   : > { %v5599_v40 = vpop.f32.mrf.mxu1  ;;  %v3341_v39 = vadd.f32 %v4373_v7, %v3300_v16 }
 0x20a   : > { %v4375_v56 = vpop.f32.mrf.mxu0 }
 0x20b   : > { %v4397_v42 = vpop.f32.mrf.mxu1  ;;  %v4376_v14 = vadd.f32 %v4375_v56, %v4374_v27 }
 0x20c   : > { %v4398_v25 = vadd.f32 %v4397_v42, %v5599_v40 }
 0x20d   : > { %v5687_v43 = vld [vmem:[#allocation13_spill] sm:$0xff]  ;;  %v3344_v32 = vadd.f32 %v4376_v14, %v3303_v22 }
 0x20e   : > { %v4395_v12 = vadd.f32 %v5597_v31, %v5687_v43 }
 0x20f   : > { %v3385_v24 = vadd.f32 %v4398_v25, %v3344_v32 }
 0x210   : > { %v3382_v26 = vadd.f32 %v4395_v12, %v3341_v39 }
 0x223   : > { %v4415_v29 = vpop.f32.mrf.mxu0 }
 0x225   : > { %v4437_v53 = vpop.f32.mrf.mxu1  ;;  %v4416_v0 = vpop.f32.mrf.mxu0 }
 0x226   : > { %v4417_v15 = vadd.f32 %v4416_v0, %v4415_v29 }
 0x227   : > { %v4438_v49 = vpop.f32.mrf.mxu1  ;;  %v4418_v1 = vpop.f32.mrf.mxu0 }
 0x228   : > { %v3423_v48 = vadd.f32 %v4417_v15, %v3382_v26  ;;  %v4439_v50 = vadd.f32 %v4438_v49, %v4437_v53 }
 0x229   : > { %v4440_v54 = vpop.f32.mrf.mxu1  ;;  %v4419_v35 = vpop.f32.mrf.mxu0 }
 0x22a   : > { %v4420_v51 = vadd.f32 %v4419_v35, %v4418_v1  ;;  %v3464_v31 = vadd.f32 %v4439_v50, %v3423_v48 }
 0x22b   : > { %v4441_v3 = vpop.f32.mrf.mxu1 }
 0x22c   : > { %v3426_v27 = vadd.f32 %v4420_v51, %v3385_v24  ;;  %v4442_v47 = vadd.f32 %v4441_v3, %v4440_v54 }
 0x22e   : > { %v3467_v30 = vadd.f32 %v4442_v47, %v3426_v27 }
 0x243   : > { %v4459_v9 = vpop.f32.mrf.mxu0 }
 0x245   : > { %v4481_v63 = vpop.f32.mrf.mxu1  ;;  %v4460_v45 = vpop.f32.mrf.mxu0 }
 0x246   : > { %v4461_v44 = vadd.f32 %v4460_v45, %v4459_v9 }
 0x247   : > { %v4482_v34 = vpop.f32.mrf.mxu1  ;;  %v4462_v41 = vpop.f32.mrf.mxu0 }
 0x248   : > { %v3505_v58 = vadd.f32 %v4461_v44, %v3464_v31  ;;  %v4483_v59 = vadd.f32 %v4482_v34, %v4481_v63 }
 0x249   : > { %v4484_v38 = vpop.f32.mrf.mxu1  ;;  %v4463_v28 = vpop.f32.mrf.mxu0 }
 0x24a   : > { %v4464_v61 = vadd.f32 %v4463_v28, %v4462_v41  ;;  %v3546_v42 = vadd.f32 %v4483_v59, %v3505_v58 }
 0x24b   : > { %v4485_v17 = vpop.f32.mrf.mxu1 }
 0x24c   : > { %v3508_v53 = vadd.f32 %v4464_v61, %v3467_v30  ;;  %v4486_v49 = vadd.f32 %v4485_v17, %v4484_v38 }
 0x24d   : > { %v3627_v36 = vpop.f32.mrf.mxu1 }
 0x24e   : > { %v3549_v0 = vadd.f32 %v4486_v49, %v3508_v53 }
 0x24f   : > { %v4518_v20 = vpop.f32.mrf.mxu1 }
 0x251   : > { %v3630_v46 = vpop.f32.mrf.mxu1 }
 0x253   : > { %v4519_v56 = vpop.f32.mrf.mxu1 }
 0x263   : > { %v4503_v29 = vpop.f32.mrf.mxu0 }
 0x265   : > { %v4504_v40 = vpop.f32.mrf.mxu0 }
 0x266   : > { %v4505_v52 = vadd.f32 %v4504_v40, %v4503_v29 }
 0x267   : > { %v4506_v23 = vpop.f32.mrf.mxu0 }
 0x268   : > { %v3587_v55 = vadd.f32 %v4505_v52, %v3546_v42 }
 0x269   : > { %v4507_v57 = vpop.f32.mrf.mxu0 }
 0x26a   : > { %v4508_v2 = vadd.f32 %v4507_v57, %v4506_v23  ;;  %v3628_v54 = vadd.f32 %v3627_v36, %v3587_v55 }
 0x26c   : > { %v3590_v60 = vadd.f32 %v4508_v2, %v3549_v0  ;;  %4900 = vtanh.f32 %v3628_v54 }
 0x26e   : > { %v3631_v62 = vadd.f32 %v3630_v46, %v3590_v60 }
 0x270   : > { %4902 = vtanh.f32 %v3631_v62 }
 0x279   : > { %v4901_v3 = vpop.eup %4900 }
 0x27d   : > { %v4903_v5 = vpop.eup %4902 }
 0x27e   : > { %v4089_v33 = vpack.c.bf16 %v4903_v5, %v4901_v3 }
 0x280   : > { %4090 = vst [vmem:[%s233_s11] sm:$0xff] %v4089_v33  }
 0x281   : > { %4999 = shalt.err (!%p4996_p3)
}
 0x282   : > { %s5000_s21 = scalar_lea.hbm %s5620_s17, 128  ;;  %s5004_s5 = scalar_lea.hbm %s5668_s3, 256 }
 0x283   : > { %p5001_p12 = scmp.ne.s32.totalorder %s5620_s17, %s5000_s21  ;;  %p5005_p7 = scmp.lt.s32.totalorder %s5620_s17, %s5668_s3 }
 0x284   : > { %p5006_p10 = scmp.lt.s32.totalorder %s5004_s5, %s5000_s21 }
 0x285   : > { %p5002_p13 = pnand %p5001_p12, %p5688_p4 }
 0x286   : > { %p5007_p6 = por %p5006_p10, %p5005_p7 }
 0x287   : > { %p5003_p8 = pneg %p5002_p13 }
 0x289   : > { %p5008_p2 = pnand %p5007_p6, %p5003_p8 }
 0x28b   : > { %5011 = shalt.err (!%p5008_p2)
}
 0x28c   : > { %s5067_s28 = smov 64   ;;  %s5068_s4 = smov 128  }
 0x28d   : > { %s5069_s11 = smov 4  }
 0x28e   : > { %4530 = dma.vmem_to_hbm [thread:$0]  (%p5688_p4), %s5622_s18, 128, %s5620_s17, %s3647_s20, %s5067_s28, %s5068_s4, %s5069_s11  }
 0x28f PF: > { %s3674_s9 = sand.u32 1, %s5042_s12   ;;  %p5689_p5 = scmp.ne.s32.totalorder %s5676_s29, 0 }
 0x290   : > { %p5690_p9 = scmp.ge.s32.totalorder %s5054_s15, 2  ;;  %s3675_s10 = scalar_lea.sflag [#allocation4], %s3674_s9 }
 0x292   : > { %p4544_p1 = pnand %p5690_p9, %p5689_p5 }
 0x294   : > { %p4545_p11 = pneg %p4544_p1 }
 0x296   : > { %5037 = dma.done.wait (%p4545_p11), %s3675_s10, 128  }
 0x297   : > { %5039 = vsyncadd (%p4545_p11), %s3675_s10, 4294967168  ;;  %p17_p0 = scmp.ge.s32.totalorder %s5111_s16, 4   ;;  %s5691_s12 = smov %s5046_s13 }
 0x298   : > { %s5692_s13 = smov %s5050_s14  ;;  %s5693_s14 = smov %s5122_s19 }
 0x299   : > { %s5694_s15 = smov %s5111_s16  ;;  %19 = sbr.rel (!%p17_p0) target bundleno = 6 (0x6), region = 93 }
 0x29e   :  { %3680 = vsyncpa [#allocation3], 1 }
 0x29f   :  { %3682 = vsyncpa [#allocation3 + $0x1], 1 }
 0x2a0   :  { %3683 = vsyncpa [#allocation6], 1 }
 0x2a1   :  { %3685 = vsyncpa [#allocation6 + $0x1], 1 }
 0x2a2   :  { %3686 = vsyncpa [#allocation4], 1 }
 0x2a3   :  { %3688 = vsyncpa [#allocation4 + $0x1], 1 }

</bundles_post_ra>
